<compile_context>
chip_gen: v6e
topology: v6e:2x2x1
jax: 0.10.0
libtpu: 0.0.40
codegen_flags: <defaults>
</compile_context>

<pallas_src>
import jax
import jax.numpy as jnp
import numpy as np
from jax.experimental import pallas as pl
from jax.experimental.pallas import tpu as pltpu


def _make_gru_cost_kernel(num_layers, hidden_size, batch, time_chunk, emb_size,
                          vocab, smooth_zero):
    """One grid step = one chunk of `time_chunk` timesteps (layer-major)."""
    L, H, B, TC, E, V = num_layers, hidden_size, batch, time_chunk, emb_size, vocab

    def kernel(x_ref, *refs):
        # refs: [wx_0, wh_0, bx_0, bhn_0, ..., wc, bc, out_ref, h_carry]
        wx_refs = [refs[4 * l + 0] for l in range(L)]   # [in, 3H]  gates r|z|n
        wh_refs = [refs[4 * l + 1] for l in range(L)]   # [H, 3H]   gates r|z|n
        bx_refs = [refs[4 * l + 2] for l in range(L)]   # [1, 3H]
        bhn_refs = [refs[4 * l + 3] for l in range(L)]  # [1, H]
        wc_ref = refs[4 * L + 0]                        # [H, V]
        bc_ref = refs[4 * L + 1]                        # [1, V]
        out_ref = refs[4 * L + 2]                       # [TC*B, V]
        hc_ref = refs[4 * L + 3]                        # [L, B, H] chunk carry

        # zero_state only at the first chunk; otherwise carry from prev chunk.
        @pl.when(pl.program_id(0) == 0)
        def _():
            hc_ref[...] = jnp.zeros_like(hc_ref)

        def dot(a, b):
            # TODO(synk): at production H/V cast MXU operands to bf16
            # (preferred_element_type stays f32) on v6e/v7x; f32 kept here for
            # exact parity with the f32 reference at 1e-5.
            return jnp.dot(a, b, preferred_element_type=jnp.float32)

        # [TC, B, E] -> [TC*B, E]: collapses leading dims only (last dim kept).
        x = x_ref[...].reshape(TC * B, E)

        for l in range(L):
            wh = wh_refs[l][...]                                   # [H, 3H]
            # Input-side gates for the WHOLE chunk: one batched MXU matmul,
            # off the serial recurrence chain; bias broadcast happens once.
            gi = dot(x, wx_refs[l][...]) + bx_refs[l][...]         # [TC*B, 3H]
            # Hoisted bias broadcast (not re-emitted inside the unrolled loop).
            bhn = jnp.broadcast_to(bhn_refs[l][...], (B, H))

            h = hc_ref[l]                                          # [B, H]
            hs = []
            # TODO(synk): for large time_chunk switch this fully-unrolled loop
            # to lax.fori_loop(..., unroll=4..8) + a VMEM slab so live ranges
            # stay bounded; unrolled path targets small chunks.
            for t in range(TC):
                gi_t = gi[t * B:(t + 1) * B, :]        # static sublane slice
                gh = dot(h, wh)                        # single MXU push / step
                rz = jax.nn.sigmoid(gi_t[:, :2 * H] + gh[:, :2 * H])
                r = rz[:, :H]
                z = rz[:, H:]
                hn = gh[:, 2 * H:] + bhn
                n = jnp.tanh(gi_t[:, 2 * H:] + r * hn)
                h = (1.0 - z) * n + z * h
                hs.append(h)
            hc_ref[l] = h                              # carry to next chunk
            # Next-layer input slab stays in vregs (no VMEM round trip).
            x = jnp.concatenate(hs, axis=0)            # [TC*B, H]
            # TODO(synk): inter-layer dropout (opt.disc_dropout) is a
            # training-mode op; eval semantics (identity) used here.

        # One cost projection + smooth-abs for the whole chunk, one block store.
        c = dot(x, wc_ref[...]) + bc_ref[...]          # [TC*B, V]
        c_abs = jnp.abs(c)
        if smooth_zero > 0.0001:
            sel = (c_abs >= smooth_zero).astype(jnp.float32)
            out = sel * (c_abs - smooth_zero * 0.5) + (1.0 - sel) * (
                c * c * (1.0 / (2.0 * smooth_zero)))
        else:
            out = c_abs
        out_ref[...] = out.astype(out_ref.dtype)

    return kernel


def discriminator_forward(actions, params, *, smooth_zero, time_chunk=None):
    """Forward pass of Discriminator (non gradient-penalize branch).

    actions: int32 [B, T]
    returns: float32 [B, T, V]  (smoothed costs; onehot_actions is None)
    """
    emb = params["embedding"]                        # [V, E]
    gru = params["gru"]                              # per-layer dicts
    wc, bc = params["cost_w"], params["cost_b"]      # [V, H], [V]

    B, T = actions.shape
    V, E = emb.shape
    H = wc.shape[1]
    L = len(gru)

    TC = T if time_chunk is None else time_chunk
    assert T % TC == 0, "seq_len must be divisible by time_chunk"
    num_chunks = T // TC

    # zero_input prepended; the last action's output is dropped by the module
    # (costs[:, :-1]), so that timestep is never computed.
    tokens = jnp.concatenate(
        [jnp.zeros((B, 1), dtype=actions.dtype), actions[:, :-1]], axis=1)   # [B, T]
    inputs = jnp.take(emb, tokens, axis=0).astype(jnp.float32)               # [B, T, E]
    inputs_tm = jnp.transpose(inputs, (1, 0, 2))                             # [T, B, E]

    kernel = _make_gru_cost_kernel(L, H, B, TC, E, V, smooth_zero)

    in_specs = [pl.BlockSpec((TC, B, E), lambda c: (c, 0, 0))]
    args = [inputs_tm]
    for layer in gru:
        w_ih, w_hh = layer["w_ih"], layer["w_hh"]        # [3H, in], [3H, H]
        b_ih, b_hh = layer["b_ih"], layer["b_hh"]        # [3H], [3H]
        in_dim = w_ih.shape[1]
        # Pre-transpose so the kernel does x @ Wx / h @ Wh with gates packed
        # along the lane axis in PyTorch order (r | z | n).
        wx = jnp.transpose(w_ih)                                     # [in, 3H]
        wh = jnp.transpose(w_hh)                                     # [H, 3H]
        # Fold b_ih + b_hh for r/z into the input-side bias; keep b_hh_n
        # separate (it is scaled by r inside the new-gate computation).
        bx = (b_ih + jnp.concatenate(
            [b_hh[:2 * H], jnp.zeros((H,), b_hh.dtype)])).reshape(1, 3 * H)
        bhn = b_hh[2 * H:].reshape(1, H)                             # [1, H]
        # NOTE: these specs are constant across chunks; at production H/V on
        # v7x mark them pipeline_mode=pl.Buffered(1) (drop the dead second
        # buffer) and tile the cost head over V.  Irrelevant at these sizes.
        in_specs += [
            pl.BlockSpec((in_dim, 3 * H), lambda c: (0, 0)),
            pl.BlockSpec((H, 3 * H), lambda c: (0, 0)),
            pl.BlockSpec((1, 3 * H), lambda c: (0, 0)),
            pl.BlockSpec((1, H), lambda c: (0, 0)),
        ]
        args += [wx, wh, bx, bhn]
    # Cost head, pre-transposed to [H, V].
    in_specs += [
        pl.BlockSpec((H, V), lambda c: (0, 0)),
        pl.BlockSpec((1, V), lambda c: (0, 0)),
    ]
    args += [jnp.transpose(wc), bc.reshape(1, V)]

    # TODO(synk): on v7x (2 TensorCores) add a leading "parallel" grid axis
    # over batch halves once B >= 16 so each core runs the recurrence on B/2.
    out_flat = pl.pallas_call(
        kernel,
        out_shape=jax.ShapeDtypeStruct((T * B, V), jnp.float32),
        grid_spec=pltpu.PrefetchScalarGridSpec(
            num_scalar_prefetch=0,
            grid=(num_chunks,),
            in_specs=in_specs,
            out_specs=pl.BlockSpec((TC * B, V), lambda c: (c, 0)),
            scratch_shapes=[
                pltpu.VMEM((L, B, H), jnp.float32),      # hidden-state carry
            ],
        ),
        compiler_params=pltpu.CompilerParams(
            dimension_semantics=("arbitrary",)),          # serial time recurrence
    )(*args)

    costs = jnp.transpose(out_flat.reshape(T, B, V), (1, 0, 2))      # [B, T, V]
    return costs


def _reference_forward(actions, params, *, smooth_zero):
    """Pure-JAX reference (mirrors the PyTorch module) for correctness check."""
    emb = params["embedding"]
    gru = params["gru"]
    wc, bc = params["cost_w"], params["cost_b"]
    B, T = actions.shape
    H = wc.shape[1]
    L = len(gru)

    padded = jnp.concatenate([jnp.zeros((B, 1), actions.dtype), actions], axis=1)
    x_seq = jnp.take(emb, padded, axis=0)  # [B, T+1, E]
    h = [jnp.zeros((B, H), jnp.float32) for _ in range(L)]
    outs = []
    for t in range(T + 1):
        x = x_seq[:, t]
        for l in range(L):
            gi = x @ gru[l]["w_ih"].T + gru[l]["b_ih"]
            gh = h[l] @ gru[l]["w_hh"].T + gru[l]["b_hh"]
            i_r, i_z, i_n = jnp.split(gi, 3, axis=1)
            h_r, h_z, h_n = jnp.split(gh, 3, axis=1)
            r = jax.nn.sigmoid(i_r + h_r)
            z = jax.nn.sigmoid(i_z + h_z)
            n = jnp.tanh(i_n + r * h_n)
            h[l] = (1.0 - z) * n + z * h[l]
            x = h[l]
        outs.append(x @ wc.T + bc)
    costs = jnp.stack(outs, axis=1)[:, :-1]   # [B, T, V]
    c_abs = jnp.abs(costs)
    if smooth_zero > 0.0001:
        sel = (c_abs >= smooth_zero).astype(jnp.float32)
        return sel * (c_abs - smooth_zero / 2.0) + (1.0 - sel) * (costs ** 2 / (smooth_zero * 2.0))
    return c_abs


if __name__ == "__main__":
    # Small "opt" configuration consistent with the module.
    batch_size = 8
    seq_len = 8
    vocab_size = 32
    emb_size = 16
    disc_hidden_size = 32
    disc_layers = 2
    smooth_zero = 0.1

    key = jax.random.PRNGKey(0)
    keys = jax.random.split(key, 4 + 4 * disc_layers)

    params = {
        "embedding": 0.1 * jax.random.normal(keys[0], (vocab_size, emb_size), jnp.float32),
        "cost_w": 0.1 * jax.random.normal(keys[1], (vocab_size, disc_hidden_size), jnp.float32),
        "cost_b": 0.1 * jax.random.normal(keys[2], (vocab_size,), jnp.float32),
        "gru": [],
    }
    for l in range(disc_layers):
        in_dim = emb_size if l == 0 else disc_hidden_size
        k = keys[4 + 4 * l: 8 + 4 * l]
        params["gru"].append({
            "w_ih": 0.1 * jax.random.normal(k[0], (3 * disc_hidden_size, in_dim), jnp.float32),
            "w_hh": 0.1 * jax.random.normal(k[1], (3 * disc_hidden_size, disc_hidden_size), jnp.float32),
            "b_ih": 0.1 * jax.random.normal(k[2], (3 * disc_hidden_size,), jnp.float32),
            "b_hh": 0.1 * jax.random.normal(k[3], (3 * disc_hidden_size,), jnp.float32),
        })

    actions = jax.random.randint(keys[3], (batch_size, seq_len), 0, vocab_size, dtype=jnp.int32)

    costs = discriminator_forward(actions, params, smooth_zero=smooth_zero)
    costs = jax.block_until_ready(costs)

    ref = _reference_forward(actions, params, smooth_zero=smooth_zero)
    np.testing.assert_allclose(np.asarray(costs), np.asarray(ref), rtol=1e-5, atol=1e-5)

    assert costs.shape == (batch_size, seq_len, vocab_size)
    print("KERNEL_OK")
</pallas_src>

<mosaic_0001>
module attributes {stable_mosaic.version = 11 : i64} {
  func.func @kernel(%arg0: i32, %arg1: memref<8x8x16xf32, #tpu.memory_space<vmem>>, %arg2: memref<16x96xf32, #tpu.memory_space<vmem>>, %arg3: memref<32x96xf32, #tpu.memory_space<vmem>>, %arg4: memref<1x96xf32, #tpu.memory_space<vmem>>, %arg5: memref<1x32xf32, #tpu.memory_space<vmem>>, %arg6: memref<32x96xf32, #tpu.memory_space<vmem>>, %arg7: memref<32x96xf32, #tpu.memory_space<vmem>>, %arg8: memref<1x96xf32, #tpu.memory_space<vmem>>, %arg9: memref<1x32xf32, #tpu.memory_space<vmem>>, %arg10: memref<32x32xf32, #tpu.memory_space<vmem>>, %arg11: memref<1x32xf32, #tpu.memory_space<vmem>>, %arg12: memref<64x32xf32, #tpu.memory_space<vmem>>, %arg13: memref<2x8x32xf32, #tpu.memory_space<vmem>>) attributes {dimension_semantics = [#tpu.dimension_semantics<arbitrary>], iteration_bounds = array<i64: 1>, scalar_prefetch = 0 : i64, scratch_operands = 1 : i64, tpu.core_type = #tpu.core_type<tc>, window_params = [{transform_indices = @transform_0, window_bounds = array<i64: 8, 8, 16>}, {pipeline_mode = #tpu.pipeline_mode<synchronous>, transform_indices = @transform_1, window_bounds = array<i64: 16, 96>}, {pipeline_mode = #tpu.pipeline_mode<synchronous>, transform_indices = @transform_2, window_bounds = array<i64: 32, 96>}, {pipeline_mode = #tpu.pipeline_mode<synchronous>, transform_indices = @transform_3, window_bounds = array<i64: 1, 96>}, {pipeline_mode = #tpu.pipeline_mode<synchronous>, transform_indices = @transform_4, window_bounds = array<i64: 1, 32>}, {pipeline_mode = #tpu.pipeline_mode<synchronous>, transform_indices = @transform_5, window_bounds = array<i64: 32, 96>}, {pipeline_mode = #tpu.pipeline_mode<synchronous>, transform_indices = @transform_6, window_bounds = array<i64: 32, 96>}, {pipeline_mode = #tpu.pipeline_mode<synchronous>, transform_indices = @transform_7, window_bounds = array<i64: 1, 96>}, {pipeline_mode = #tpu.pipeline_mode<synchronous>, transform_indices = @transform_8, window_bounds = array<i64: 1, 32>}, {pipeline_mode = #tpu.pipeline_mode<synchronous>, transform_indices = @transform_9, window_bounds = array<i64: 32, 32>}, {pipeline_mode = #tpu.pipeline_mode<synchronous>, transform_indices = @transform_10, window_bounds = array<i64: 1, 32>}, {transform_indices = @transform_11, window_bounds = array<i64: 64, 32>}]} {
    %c0_i32 = arith.constant 0 : i32
    %0 = arith.cmpi eq, %arg0, %c0_i32 : i32
    %1 = arith.extui %0 : i1 to i32
    %c0_i32_0 = arith.constant 0 : i32
    %2 = arith.cmpi ne, %1, %c0_i32_0 : i32
    scf.if %2 {
      %cst_90 = arith.constant 0.000000e+00 : f32
      %424 = vector.broadcast %cst_90 : f32 to vector<2x8x32xf32>
      %c0_91 = arith.constant 0 : index
      %c0_92 = arith.constant 0 : index
      %c0_93 = arith.constant 0 : index
      %425 = vector.load %arg13[%c0_91, %c0_92, %c0_93] : memref<2x8x32xf32, #tpu.memory_space<vmem>>, vector<2x8x32xf32>
      tpu.vector_store %arg13[%c0_91, %c0_92, %c0_93], %424 {strides = array<i32>} : memref<2x8x32xf32, #tpu.memory_space<vmem>>, vector<2x8x32xf32>,
    } else {
    }
    %c0 = arith.constant 0 : index
    %c0_1 = arith.constant 0 : index
    %c0_2 = arith.constant 0 : index
    %3 = vector.load %arg1[%c0, %c0_1, %c0_2] : memref<8x8x16xf32, #tpu.memory_space<vmem>>, vector<8x8x16xf32>
    %4 = vector.shape_cast %3 : vector<8x8x16xf32> to vector<64x16xf32>
    %c0_3 = arith.constant 0 : index
    %c0_4 = arith.constant 0 : index
    %5 = vector.load %arg3[%c0_3, %c0_4] : memref<32x96xf32, #tpu.memory_space<vmem>>, vector<32x96xf32>
    %c0_5 = arith.constant 0 : index
    %c0_6 = arith.constant 0 : index
    %6 = vector.load %arg2[%c0_5, %c0_6] : memref<16x96xf32, #tpu.memory_space<vmem>>, vector<16x96xf32>
    %cst = arith.constant dense<0.000000e+00> : vector<64x96xf32>
    %7 = tpu.matmul %4, %6, %cst {dimension_numbers = #tpu.dot_dimension_numbers<[1], [0], [0], [1], [0, 0, 1, 1], [], []>} : vector<64x16xf32>, vector<16x96xf32>, vector<64x96xf32> -> vector<64x96xf32>
    %c0_7 = arith.constant 0 : index
    %c0_8 = arith.constant 0 : index
    %8 = vector.load %arg4[%c0_7, %c0_8] : memref<1x96xf32, #tpu.memory_space<vmem>>, vector<1x96xf32>
    %9 = vector.broadcast %8 : vector<1x96xf32> to vector<64x96xf32>
    %10 = arith.addf %7, %9 : vector<64x96xf32>
    %c0_9 = arith.constant 0 : index
    %c0_10 = arith.constant 0 : index
    %11 = vector.load %arg5[%c0_9, %c0_10] : memref<1x32xf32, #tpu.memory_space<vmem>>, vector<1x32xf32>
    %12 = vector.shape_cast %11 : vector<1x32xf32> to vector<1x32xf32>
    %13 = vector.broadcast %12 : vector<1x32xf32> to vector<8x32xf32>
    %c0_11 = arith.constant 0 : index
    %c0_12 = arith.constant 0 : index
    %c0_13 = arith.constant 0 : index
    %14 = vector.load %arg13[%c0_11, %c0_12, %c0_13] : memref<2x8x32xf32, #tpu.memory_space<vmem>>, vector<1x8x32xf32>
    %15 = vector.shape_cast %14 : vector<1x8x32xf32> to vector<8x32xf32>
    %16 = vector.extract_strided_slice %10 {offsets = [0, 0], sizes = [8, 96], strides = [1, 1]} : vector<64x96xf32> to vector<8x96xf32>
    %cst_14 = arith.constant dense<0.000000e+00> : vector<8x96xf32>
    %17 = tpu.matmul %15, %5, %cst_14 {dimension_numbers = #tpu.dot_dimension_numbers<[1], [0], [0], [1], [0, 0, 1, 1], [], []>} : vector<8x32xf32>, vector<32x96xf32>, vector<8x96xf32> -> vector<8x96xf32>
    %18 = vector.extract_strided_slice %16 {offsets = [0, 0], sizes = [8, 64], strides = [1, 1]} : vector<8x96xf32> to vector<8x64xf32>
    %19 = vector.extract_strided_slice %17 {offsets = [0, 0], sizes = [8, 64], strides = [1, 1]} : vector<8x96xf32> to vector<8x64xf32>
    %20 = arith.addf %18, %19 : vector<8x64xf32>
    %21 = arith.negf %20 : vector<8x64xf32>
    %22 = math.exp %21 : vector<8x64xf32>
    %cst_15 = arith.constant 1.000000e+00 : f32
    %23 = vector.broadcast %cst_15 : f32 to vector<8x64xf32>
    %24 = arith.addf %23, %22 : vector<8x64xf32>
    %25 = arith.divf %23, %24 : vector<8x64xf32>
    %26 = vector.extract_strided_slice %25 {offsets = [0, 0], sizes = [8, 32], strides = [1, 1]} : vector<8x64xf32> to vector<8x32xf32>
    %27 = vector.extract_strided_slice %25 {offsets = [0, 32], sizes = [8, 32], strides = [1, 1]} : vector<8x64xf32> to vector<8x32xf32>
    %28 = vector.extract_strided_slice %17 {offsets = [0, 64], sizes = [8, 32], strides = [1, 1]} : vector<8x96xf32> to vector<8x32xf32>
    %29 = arith.addf %28, %13 : vector<8x32xf32>
    %30 = vector.extract_strided_slice %16 {offsets = [0, 64], sizes = [8, 32], strides = [1, 1]} : vector<8x96xf32> to vector<8x32xf32>
    %31 = arith.mulf %26, %29 : vector<8x32xf32>
    %32 = arith.addf %30, %31 : vector<8x32xf32>
    %33 = math.tanh %32 : vector<8x32xf32>
    %cst_16 = arith.constant 1.000000e+00 : f32
    %34 = vector.broadcast %cst_16 : f32 to vector<8x32xf32>
    %35 = arith.subf %34, %27 : vector<8x32xf32>
    %36 = arith.mulf %35, %33 : vector<8x32xf32>
    %37 = arith.mulf %27, %15 : vector<8x32xf32>
    %38 = arith.addf %36, %37 : vector<8x32xf32>
    %39 = vector.extract_strided_slice %10 {offsets = [8, 0], sizes = [8, 96], strides = [1, 1]} : vector<64x96xf32> to vector<8x96xf32>
    %cst_17 = arith.constant dense<0.000000e+00> : vector<8x96xf32>
    %40 = tpu.matmul %38, %5, %cst_17 {dimension_numbers = #tpu.dot_dimension_numbers<[1], [0], [0], [1], [0, 0, 1, 1], [], []>} : vector<8x32xf32>, vector<32x96xf32>, vector<8x96xf32> -> vector<8x96xf32>
    %41 = vector.extract_strided_slice %39 {offsets = [0, 0], sizes = [8, 64], strides = [1, 1]} : vector<8x96xf32> to vector<8x64xf32>
    %42 = vector.extract_strided_slice %40 {offsets = [0, 0], sizes = [8, 64], strides = [1, 1]} : vector<8x96xf32> to vector<8x64xf32>
    %43 = arith.addf %41, %42 : vector<8x64xf32>
    %44 = arith.negf %43 : vector<8x64xf32>
    %45 = math.exp %44 : vector<8x64xf32>
    %cst_18 = arith.constant 1.000000e+00 : f32
    %46 = vector.broadcast %cst_18 : f32 to vector<8x64xf32>
    %47 = arith.addf %46, %45 : vector<8x64xf32>
    %48 = arith.divf %46, %47 : vector<8x64xf32>
    %49 = vector.extract_strided_slice %48 {offsets = [0, 0], sizes = [8, 32], strides = [1, 1]} : vector<8x64xf32> to vector<8x32xf32>
    %50 = vector.extract_strided_slice %48 {offsets = [0, 32], sizes = [8, 32], strides = [1, 1]} : vector<8x64xf32> to vector<8x32xf32>
    %51 = vector.extract_strided_slice %40 {offsets = [0, 64], sizes = [8, 32], strides = [1, 1]} : vector<8x96xf32> to vector<8x32xf32>
    %52 = arith.addf %51, %13 : vector<8x32xf32>
    %53 = vector.extract_strided_slice %39 {offsets = [0, 64], sizes = [8, 32], strides = [1, 1]} : vector<8x96xf32> to vector<8x32xf32>
    %54 = arith.mulf %49, %52 : vector<8x32xf32>
    %55 = arith.addf %53, %54 : vector<8x32xf32>
    %56 = math.tanh %55 : vector<8x32xf32>
    %cst_19 = arith.constant 1.000000e+00 : f32
    %57 = vector.broadcast %cst_19 : f32 to vector<8x32xf32>
    %58 = arith.subf %57, %50 : vector<8x32xf32>
    %59 = arith.mulf %58, %56 : vector<8x32xf32>
    %60 = arith.mulf %50, %38 : vector<8x32xf32>
    %61 = arith.addf %59, %60 : vector<8x32xf32>
    %62 = vector.extract_strided_slice %10 {offsets = [16, 0], sizes = [8, 96], strides = [1, 1]} : vector<64x96xf32> to vector<8x96xf32>
    %cst_20 = arith.constant dense<0.000000e+00> : vector<8x96xf32>
    %63 = tpu.matmul %61, %5, %cst_20 {dimension_numbers = #tpu.dot_dimension_numbers<[1], [0], [0], [1], [0, 0, 1, 1], [], []>} : vector<8x32xf32>, vector<32x96xf32>, vector<8x96xf32> -> vector<8x96xf32>
    %64 = vector.extract_strided_slice %62 {offsets = [0, 0], sizes = [8, 64], strides = [1, 1]} : vector<8x96xf32> to vector<8x64xf32>
    %65 = vector.extract_strided_slice %63 {offsets = [0, 0], sizes = [8, 64], strides = [1, 1]} : vector<8x96xf32> to vector<8x64xf32>
    %66 = arith.addf %64, %65 : vector<8x64xf32>
    %67 = arith.negf %66 : vector<8x64xf32>
    %68 = math.exp %67 : vector<8x64xf32>
    %cst_21 = arith.constant 1.000000e+00 : f32
    %69 = vector.broadcast %cst_21 : f32 to vector<8x64xf32>
    %70 = arith.addf %69, %68 : vector<8x64xf32>
    %71 = arith.divf %69, %70 : vector<8x64xf32>
    %72 = vector.extract_strided_slice %71 {offsets = [0, 0], sizes = [8, 32], strides = [1, 1]} : vector<8x64xf32> to vector<8x32xf32>
    %73 = vector.extract_strided_slice %71 {offsets = [0, 32], sizes = [8, 32], strides = [1, 1]} : vector<8x64xf32> to vector<8x32xf32>
    %74 = vector.extract_strided_slice %63 {offsets = [0, 64], sizes = [8, 32], strides = [1, 1]} : vector<8x96xf32> to vector<8x32xf32>
    %75 = arith.addf %74, %13 : vector<8x32xf32>
    %76 = vector.extract_strided_slice %62 {offsets = [0, 64], sizes = [8, 32], strides = [1, 1]} : vector<8x96xf32> to vector<8x32xf32>
    %77 = arith.mulf %72, %75 : vector<8x32xf32>
    %78 = arith.addf %76, %77 : vector<8x32xf32>
    %79 = math.tanh %78 : vector<8x32xf32>
    %cst_22 = arith.constant 1.000000e+00 : f32
    %80 = vector.broadcast %cst_22 : f32 to vector<8x32xf32>
    %81 = arith.subf %80, %73 : vector<8x32xf32>
    %82 = arith.mulf %81, %79 : vector<8x32xf32>
    %83 = arith.mulf %73, %61 : vector<8x32xf32>
    %84 = arith.addf %82, %83 : vector<8x32xf32>
    %85 = vector.extract_strided_slice %10 {offsets = [24, 0], sizes = [8, 96], strides = [1, 1]} : vector<64x96xf32> to vector<8x96xf32>
    %cst_23 = arith.constant dense<0.000000e+00> : vector<8x96xf32>
    %86 = tpu.matmul %84, %5, %cst_23 {dimension_numbers = #tpu.dot_dimension_numbers<[1], [0], [0], [1], [0, 0, 1, 1], [], []>} : vector<8x32xf32>, vector<32x96xf32>, vector<8x96xf32> -> vector<8x96xf32>
    %87 = vector.extract_strided_slice %85 {offsets = [0, 0], sizes = [8, 64], strides = [1, 1]} : vector<8x96xf32> to vector<8x64xf32>
    %88 = vector.extract_strided_slice %86 {offsets = [0, 0], sizes = [8, 64], strides = [1, 1]} : vector<8x96xf32> to vector<8x64xf32>
    %89 = arith.addf %87, %88 : vector<8x64xf32>
    %90 = arith.negf %89 : vector<8x64xf32>
    %91 = math.exp %90 : vector<8x64xf32>
    %cst_24 = arith.constant 1.000000e+00 : f32
    %92 = vector.broadcast %cst_24 : f32 to vector<8x64xf32>
    %93 = arith.addf %92, %91 : vector<8x64xf32>
    %94 = arith.divf %92, %93 : vector<8x64xf32>
    %95 = vector.extract_strided_slice %94 {offsets = [0, 0], sizes = [8, 32], strides = [1, 1]} : vector<8x64xf32> to vector<8x32xf32>
    %96 = vector.extract_strided_slice %94 {offsets = [0, 32], sizes = [8, 32], strides = [1, 1]} : vector<8x64xf32> to vector<8x32xf32>
    %97 = vector.extract_strided_slice %86 {offsets = [0, 64], sizes = [8, 32], strides = [1, 1]} : vector<8x96xf32> to vector<8x32xf32>
    %98 = arith.addf %97, %13 : vector<8x32xf32>
    %99 = vector.extract_strided_slice %85 {offsets = [0, 64], sizes = [8, 32], strides = [1, 1]} : vector<8x96xf32> to vector<8x32xf32>
    %100 = arith.mulf %95, %98 : vector<8x32xf32>
    %101 = arith.addf %99, %100 : vector<8x32xf32>
    %102 = math.tanh %101 : vector<8x32xf32>
    %cst_25 = arith.constant 1.000000e+00 : f32
    %103 = vector.broadcast %cst_25 : f32 to vector<8x32xf32>
    %104 = arith.subf %103, %96 : vector<8x32xf32>
    %105 = arith.mulf %104, %102 : vector<8x32xf32>
    %106 = arith.mulf %96, %84 : vector<8x32xf32>
    %107 = arith.addf %105, %106 : vector<8x32xf32>
    %108 = vector.extract_strided_slice %10 {offsets = [32, 0], sizes = [8, 96], strides = [1, 1]} : vector<64x96xf32> to vector<8x96xf32>
    %cst_26 = arith.constant dense<0.000000e+00> : vector<8x96xf32>
    %109 = tpu.matmul %107, %5, %cst_26 {dimension_numbers = #tpu.dot_dimension_numbers<[1], [0], [0], [1], [0, 0, 1, 1], [], []>} : vector<8x32xf32>, vector<32x96xf32>, vector<8x96xf32> -> vector<8x96xf32>
    %110 = vector.extract_strided_slice %108 {offsets = [0, 0], sizes = [8, 64], strides = [1, 1]} : vector<8x96xf32> to vector<8x64xf32>
    %111 = vector.extract_strided_slice %109 {offsets = [0, 0], sizes = [8, 64], strides = [1, 1]} : vector<8x96xf32> to vector<8x64xf32>
    %112 = arith.addf %110, %111 : vector<8x64xf32>
    %113 = arith.negf %112 : vector<8x64xf32>
    %114 = math.exp %113 : vector<8x64xf32>
    %cst_27 = arith.constant 1.000000e+00 : f32
    %115 = vector.broadcast %cst_27 : f32 to vector<8x64xf32>
    %116 = arith.addf %115, %114 : vector<8x64xf32>
    %117 = arith.divf %115, %116 : vector<8x64xf32>
    %118 = vector.extract_strided_slice %117 {offsets = [0, 0], sizes = [8, 32], strides = [1, 1]} : vector<8x64xf32> to vector<8x32xf32>
    %119 = vector.extract_strided_slice %117 {offsets = [0, 32], sizes = [8, 32], strides = [1, 1]} : vector<8x64xf32> to vector<8x32xf32>
    %120 = vector.extract_strided_slice %109 {offsets = [0, 64], sizes = [8, 32], strides = [1, 1]} : vector<8x96xf32> to vector<8x32xf32>
    %121 = arith.addf %120, %13 : vector<8x32xf32>
    %122 = vector.extract_strided_slice %108 {offsets = [0, 64], sizes = [8, 32], strides = [1, 1]} : vector<8x96xf32> to vector<8x32xf32>
    %123 = arith.mulf %118, %121 : vector<8x32xf32>
    %124 = arith.addf %122, %123 : vector<8x32xf32>
    %125 = math.tanh %124 : vector<8x32xf32>
    %cst_28 = arith.constant 1.000000e+00 : f32
    %126 = vector.broadcast %cst_28 : f32 to vector<8x32xf32>
    %127 = arith.subf %126, %119 : vector<8x32xf32>
    %128 = arith.mulf %127, %125 : vector<8x32xf32>
    %129 = arith.mulf %119, %107 : vector<8x32xf32>
    %130 = arith.addf %128, %129 : vector<8x32xf32>
    %131 = vector.extract_strided_slice %10 {offsets = [40, 0], sizes = [8, 96], strides = [1, 1]} : vector<64x96xf32> to vector<8x96xf32>
    %cst_29 = arith.constant dense<0.000000e+00> : vector<8x96xf32>
    %132 = tpu.matmul %130, %5, %cst_29 {dimension_numbers = #tpu.dot_dimension_numbers<[1], [0], [0], [1], [0, 0, 1, 1], [], []>} : vector<8x32xf32>, vector<32x96xf32>, vector<8x96xf32> -> vector<8x96xf32>
    %133 = vector.extract_strided_slice %131 {offsets = [0, 0], sizes = [8, 64], strides = [1, 1]} : vector<8x96xf32> to vector<8x64xf32>
    %134 = vector.extract_strided_slice %132 {offsets = [0, 0], sizes = [8, 64], strides = [1, 1]} : vector<8x96xf32> to vector<8x64xf32>
    %135 = arith.addf %133, %134 : vector<8x64xf32>
    %136 = arith.negf %135 : vector<8x64xf32>
    %137 = math.exp %136 : vector<8x64xf32>
    %cst_30 = arith.constant 1.000000e+00 : f32
    %138 = vector.broadcast %cst_30 : f32 to vector<8x64xf32>
    %139 = arith.addf %138, %137 : vector<8x64xf32>
    %140 = arith.divf %138, %139 : vector<8x64xf32>
    %141 = vector.extract_strided_slice %140 {offsets = [0, 0], sizes = [8, 32], strides = [1, 1]} : vector<8x64xf32> to vector<8x32xf32>
    %142 = vector.extract_strided_slice %140 {offsets = [0, 32], sizes = [8, 32], strides = [1, 1]} : vector<8x64xf32> to vector<8x32xf32>
    %143 = vector.extract_strided_slice %132 {offsets = [0, 64], sizes = [8, 32], strides = [1, 1]} : vector<8x96xf32> to vector<8x32xf32>
    %144 = arith.addf %143, %13 : vector<8x32xf32>
    %145 = vector.extract_strided_slice %131 {offsets = [0, 64], sizes = [8, 32], strides = [1, 1]} : vector<8x96xf32> to vector<8x32xf32>
    %146 = arith.mulf %141, %144 : vector<8x32xf32>
    %147 = arith.addf %145, %146 : vector<8x32xf32>
    %148 = math.tanh %147 : vector<8x32xf32>
    %cst_31 = arith.constant 1.000000e+00 : f32
    %149 = vector.broadcast %cst_31 : f32 to vector<8x32xf32>
    %150 = arith.subf %149, %142 : vector<8x32xf32>
    %151 = arith.mulf %150, %148 : vector<8x32xf32>
    %152 = arith.mulf %142, %130 : vector<8x32xf32>
    %153 = arith.addf %151, %152 : vector<8x32xf32>
    %154 = vector.extract_strided_slice %10 {offsets = [48, 0], sizes = [8, 96], strides = [1, 1]} : vector<64x96xf32> to vector<8x96xf32>
    %cst_32 = arith.constant dense<0.000000e+00> : vector<8x96xf32>
    %155 = tpu.matmul %153, %5, %cst_32 {dimension_numbers = #tpu.dot_dimension_numbers<[1], [0], [0], [1], [0, 0, 1, 1], [], []>} : vector<8x32xf32>, vector<32x96xf32>, vector<8x96xf32> -> vector<8x96xf32>
    %156 = vector.extract_strided_slice %154 {offsets = [0, 0], sizes = [8, 64], strides = [1, 1]} : vector<8x96xf32> to vector<8x64xf32>
    %157 = vector.extract_strided_slice %155 {offsets = [0, 0], sizes = [8, 64], strides = [1, 1]} : vector<8x96xf32> to vector<8x64xf32>
    %158 = arith.addf %156, %157 : vector<8x64xf32>
    %159 = arith.negf %158 : vector<8x64xf32>
    %160 = math.exp %159 : vector<8x64xf32>
    %cst_33 = arith.constant 1.000000e+00 : f32
    %161 = vector.broadcast %cst_33 : f32 to vector<8x64xf32>
    %162 = arith.addf %161, %160 : vector<8x64xf32>
    %163 = arith.divf %161, %162 : vector<8x64xf32>
    %164 = vector.extract_strided_slice %163 {offsets = [0, 0], sizes = [8, 32], strides = [1, 1]} : vector<8x64xf32> to vector<8x32xf32>
    %165 = vector.extract_strided_slice %163 {offsets = [0, 32], sizes = [8, 32], strides = [1, 1]} : vector<8x64xf32> to vector<8x32xf32>
    %166 = vector.extract_strided_slice %155 {offsets = [0, 64], sizes = [8, 32], strides = [1, 1]} : vector<8x96xf32> to vector<8x32xf32>
    %167 = arith.addf %166, %13 : vector<8x32xf32>
    %168 = vector.extract_strided_slice %154 {offsets = [0, 64], sizes = [8, 32], strides = [1, 1]} : vector<8x96xf32> to vector<8x32xf32>
    %169 = arith.mulf %164, %167 : vector<8x32xf32>
    %170 = arith.addf %168, %169 : vector<8x32xf32>
    %171 = math.tanh %170 : vector<8x32xf32>
    %cst_34 = arith.constant 1.000000e+00 : f32
    %172 = vector.broadcast %cst_34 : f32 to vector<8x32xf32>
    %173 = arith.subf %172, %165 : vector<8x32xf32>
    %174 = arith.mulf %173, %171 : vector<8x32xf32>
    %175 = arith.mulf %165, %153 : vector<8x32xf32>
    %176 = arith.addf %174, %175 : vector<8x32xf32>
    %177 = vector.extract_strided_slice %10 {offsets = [56, 0], sizes = [8, 96], strides = [1, 1]} : vector<64x96xf32> to vector<8x96xf32>
    %cst_35 = arith.constant dense<0.000000e+00> : vector<8x96xf32>
    %178 = tpu.matmul %176, %5, %cst_35 {dimension_numbers = #tpu.dot_dimension_numbers<[1], [0], [0], [1], [0, 0, 1, 1], [], []>} : vector<8x32xf32>, vector<32x96xf32>, vector<8x96xf32> -> vector<8x96xf32>
    %179 = vector.extract_strided_slice %177 {offsets = [0, 0], sizes = [8, 64], strides = [1, 1]} : vector<8x96xf32> to vector<8x64xf32>
    %180 = vector.extract_strided_slice %178 {offsets = [0, 0], sizes = [8, 64], strides = [1, 1]} : vector<8x96xf32> to vector<8x64xf32>
    %181 = arith.addf %179, %180 : vector<8x64xf32>
    %182 = arith.negf %181 : vector<8x64xf32>
    %183 = math.exp %182 : vector<8x64xf32>
    %cst_36 = arith.constant 1.000000e+00 : f32
    %184 = vector.broadcast %cst_36 : f32 to vector<8x64xf32>
    %185 = arith.addf %184, %183 : vector<8x64xf32>
    %186 = arith.divf %184, %185 : vector<8x64xf32>
    %187 = vector.extract_strided_slice %186 {offsets = [0, 0], sizes = [8, 32], strides = [1, 1]} : vector<8x64xf32> to vector<8x32xf32>
    %188 = vector.extract_strided_slice %186 {offsets = [0, 32], sizes = [8, 32], strides = [1, 1]} : vector<8x64xf32> to vector<8x32xf32>
    %189 = vector.extract_strided_slice %178 {offsets = [0, 64], sizes = [8, 32], strides = [1, 1]} : vector<8x96xf32> to vector<8x32xf32>
    %190 = arith.addf %189, %13 : vector<8x32xf32>
    %191 = vector.extract_strided_slice %177 {offsets = [0, 64], sizes = [8, 32], strides = [1, 1]} : vector<8x96xf32> to vector<8x32xf32>
    %192 = arith.mulf %187, %190 : vector<8x32xf32>
    %193 = arith.addf %191, %192 : vector<8x32xf32>
    %194 = math.tanh %193 : vector<8x32xf32>
    %cst_37 = arith.constant 1.000000e+00 : f32
    %195 = vector.broadcast %cst_37 : f32 to vector<8x32xf32>
    %196 = arith.subf %195, %188 : vector<8x32xf32>
    %197 = arith.mulf %196, %194 : vector<8x32xf32>
    %198 = arith.mulf %188, %176 : vector<8x32xf32>
    %199 = arith.addf %197, %198 : vector<8x32xf32>
    %c0_38 = arith.constant 0 : index
    %c0_39 = arith.constant 0 : index
    %c0_40 = arith.constant 0 : index
    %200 = vector.load %arg13[%c0_38, %c0_39, %c0_40] : memref<2x8x32xf32, #tpu.memory_space<vmem>>, vector<1x8x32xf32>
    %201 = vector.shape_cast %200 : vector<1x8x32xf32> to vector<8x32xf32>
    %202 = vector.shape_cast %199 : vector<8x32xf32> to vector<1x8x32xf32>
    tpu.vector_store %arg13[%c0_38, %c0_39, %c0_40], %202 {strides = array<i32>} : memref<2x8x32xf32, #tpu.memory_space<vmem>>, vector<1x8x32xf32>,
    %203 = tpu.concatenate %38, %61, %84, %107, %130, %153, %176, %199 in 0 : vector<8x32xf32>, vector<8x32xf32>, vector<8x32xf32>, vector<8x32xf32>, vector<8x32xf32>, vector<8x32xf32>, vector<8x32xf32>, vector<8x32xf32> -> vector<64x32xf32>
    %c0_41 = arith.constant 0 : index
    %c0_42 = arith.constant 0 : index
    %204 = vector.load %arg7[%c0_41, %c0_42] : memref<32x96xf32, #tpu.memory_space<vmem>>, vector<32x96xf32>
    %c0_43 = arith.constant 0 : index
    %c0_44 = arith.constant 0 : index
    %205 = vector.load %arg6[%c0_43, %c0_44] : memref<32x96xf32, #tpu.memory_space<vmem>>, vector<32x96xf32>
    %cst_45 = arith.constant dense<0.000000e+00> : vector<64x96xf32>
    %206 = tpu.matmul %203, %205, %cst_45 {dimension_numbers = #tpu.dot_dimension_numbers<[1], [0], [0], [1], [0, 0, 1, 1], [], []>} : vector<64x32xf32>, vector<32x96xf32>, vector<64x96xf32> -> vector<64x96xf32>
    %c0_46 = arith.constant 0 : index
    %c0_47 = arith.constant 0 : index
    %207 = vector.load %arg8[%c0_46, %c0_47] : memref<1x96xf32, #tpu.memory_space<vmem>>, vector<1x96xf32>
    %208 = vector.broadcast %207 : vector<1x96xf32> to vector<64x96xf32>
    %209 = arith.addf %206, %208 : vector<64x96xf32>
    %c0_48 = arith.constant 0 : index
    %c0_49 = arith.constant 0 : index
    %210 = vector.load %arg9[%c0_48, %c0_49] : memref<1x32xf32, #tpu.memory_space<vmem>>, vector<1x32xf32>
    %211 = vector.shape_cast %210 : vector<1x32xf32> to vector<1x32xf32>
    %212 = vector.broadcast %211 : vector<1x32xf32> to vector<8x32xf32>
    %c1 = arith.constant 1 : index
    %c0_50 = arith.constant 0 : index
    %c0_51 = arith.constant 0 : index
    %213 = vector.load %arg13[%c1, %c0_50, %c0_51] : memref<2x8x32xf32, #tpu.memory_space<vmem>>, vector<1x8x32xf32>
    %214 = vector.shape_cast %213 : vector<1x8x32xf32> to vector<8x32xf32>
    %215 = vector.extract_strided_slice %209 {offsets = [0, 0], sizes = [8, 96], strides = [1, 1]} : vector<64x96xf32> to vector<8x96xf32>
    %cst_52 = arith.constant dense<0.000000e+00> : vector<8x96xf32>
    %216 = tpu.matmul %214, %204, %cst_52 {dimension_numbers = #tpu.dot_dimension_numbers<[1], [0], [0], [1], [0, 0, 1, 1], [], []>} : vector<8x32xf32>, vector<32x96xf32>, vector<8x96xf32> -> vector<8x96xf32>
    %217 = vector.extract_strided_slice %215 {offsets = [0, 0], sizes = [8, 64], strides = [1, 1]} : vector<8x96xf32> to vector<8x64xf32>
    %218 = vector.extract_strided_slice %216 {offsets = [0, 0], sizes = [8, 64], strides = [1, 1]} : vector<8x96xf32> to vector<8x64xf32>
    %219 = arith.addf %217, %218 : vector<8x64xf32>
    %220 = arith.negf %219 : vector<8x64xf32>
    %221 = math.exp %220 : vector<8x64xf32>
    %cst_53 = arith.constant 1.000000e+00 : f32
    %222 = vector.broadcast %cst_53 : f32 to vector<8x64xf32>
    %223 = arith.addf %222, %221 : vector<8x64xf32>
    %224 = arith.divf %222, %223 : vector<8x64xf32>
    %225 = vector.extract_strided_slice %224 {offsets = [0, 0], sizes = [8, 32], strides = [1, 1]} : vector<8x64xf32> to vector<8x32xf32>
    %226 = vector.extract_strided_slice %224 {offsets = [0, 32], sizes = [8, 32], strides = [1, 1]} : vector<8x64xf32> to vector<8x32xf32>
    %227 = vector.extract_strided_slice %216 {offsets = [0, 64], sizes = [8, 32], strides = [1, 1]} : vector<8x96xf32> to vector<8x32xf32>
    %228 = arith.addf %227, %212 : vector<8x32xf32>
    %229 = vector.extract_strided_slice %215 {offsets = [0, 64], sizes = [8, 32], strides = [1, 1]} : vector<8x96xf32> to vector<8x32xf32>
    %230 = arith.mulf %225, %228 : vector<8x32xf32>
    %231 = arith.addf %229, %230 : vector<8x32xf32>
    %232 = math.tanh %231 : vector<8x32xf32>
    %cst_54 = arith.constant 1.000000e+00 : f32
    %233 = vector.broadcast %cst_54 : f32 to vector<8x32xf32>
    %234 = arith.subf %233, %226 : vector<8x32xf32>
    %235 = arith.mulf %234, %232 : vector<8x32xf32>
    %236 = arith.mulf %226, %214 : vector<8x32xf32>
    %237 = arith.addf %235, %236 : vector<8x32xf32>
    %238 = vector.extract_strided_slice %209 {offsets = [8, 0], sizes = [8, 96], strides = [1, 1]} : vector<64x96xf32> to vector<8x96xf32>
    %cst_55 = arith.constant dense<0.000000e+00> : vector<8x96xf32>
    %239 = tpu.matmul %237, %204, %cst_55 {dimension_numbers = #tpu.dot_dimension_numbers<[1], [0], [0], [1], [0, 0, 1, 1], [], []>} : vector<8x32xf32>, vector<32x96xf32>, vector<8x96xf32> -> vector<8x96xf32>
    %240 = vector.extract_strided_slice %238 {offsets = [0, 0], sizes = [8, 64], strides = [1, 1]} : vector<8x96xf32> to vector<8x64xf32>
    %241 = vector.extract_strided_slice %239 {offsets = [0, 0], sizes = [8, 64], strides = [1, 1]} : vector<8x96xf32> to vector<8x64xf32>
    %242 = arith.addf %240, %241 : vector<8x64xf32>
    %243 = arith.negf %242 : vector<8x64xf32>
    %244 = math.exp %243 : vector<8x64xf32>
    %cst_56 = arith.constant 1.000000e+00 : f32
    %245 = vector.broadcast %cst_56 : f32 to vector<8x64xf32>
    %246 = arith.addf %245, %244 : vector<8x64xf32>
    %247 = arith.divf %245, %246 : vector<8x64xf32>
    %248 = vector.extract_strided_slice %247 {offsets = [0, 0], sizes = [8, 32], strides = [1, 1]} : vector<8x64xf32> to vector<8x32xf32>
    %249 = vector.extract_strided_slice %247 {offsets = [0, 32], sizes = [8, 32], strides = [1, 1]} : vector<8x64xf32> to vector<8x32xf32>
    %250 = vector.extract_strided_slice %239 {offsets = [0, 64], sizes = [8, 32], strides = [1, 1]} : vector<8x96xf32> to vector<8x32xf32>
    %251 = arith.addf %250, %212 : vector<8x32xf32>
    %252 = vector.extract_strided_slice %238 {offsets = [0, 64], sizes = [8, 32], strides = [1, 1]} : vector<8x96xf32> to vector<8x32xf32>
    %253 = arith.mulf %248, %251 : vector<8x32xf32>
    %254 = arith.addf %252, %253 : vector<8x32xf32>
    %255 = math.tanh %254 : vector<8x32xf32>
    %cst_57 = arith.constant 1.000000e+00 : f32
    %256 = vector.broadcast %cst_57 : f32 to vector<8x32xf32>
    %257 = arith.subf %256, %249 : vector<8x32xf32>
    %258 = arith.mulf %257, %255 : vector<8x32xf32>
    %259 = arith.mulf %249, %237 : vector<8x32xf32>
    %260 = arith.addf %258, %259 : vector<8x32xf32>
    %261 = vector.extract_strided_slice %209 {offsets = [16, 0], sizes = [8, 96], strides = [1, 1]} : vector<64x96xf32> to vector<8x96xf32>
    %cst_58 = arith.constant dense<0.000000e+00> : vector<8x96xf32>
    %262 = tpu.matmul %260, %204, %cst_58 {dimension_numbers = #tpu.dot_dimension_numbers<[1], [0], [0], [1], [0, 0, 1, 1], [], []>} : vector<8x32xf32>, vector<32x96xf32>, vector<8x96xf32> -> vector<8x96xf32>
    %263 = vector.extract_strided_slice %261 {offsets = [0, 0], sizes = [8, 64], strides = [1, 1]} : vector<8x96xf32> to vector<8x64xf32>
    %264 = vector.extract_strided_slice %262 {offsets = [0, 0], sizes = [8, 64], strides = [1, 1]} : vector<8x96xf32> to vector<8x64xf32>
    %265 = arith.addf %263, %264 : vector<8x64xf32>
    %266 = arith.negf %265 : vector<8x64xf32>
    %267 = math.exp %266 : vector<8x64xf32>
    %cst_59 = arith.constant 1.000000e+00 : f32
    %268 = vector.broadcast %cst_59 : f32 to vector<8x64xf32>
    %269 = arith.addf %268, %267 : vector<8x64xf32>
    %270 = arith.divf %268, %269 : vector<8x64xf32>
    %271 = vector.extract_strided_slice %270 {offsets = [0, 0], sizes = [8, 32], strides = [1, 1]} : vector<8x64xf32> to vector<8x32xf32>
    %272 = vector.extract_strided_slice %270 {offsets = [0, 32], sizes = [8, 32], strides = [1, 1]} : vector<8x64xf32> to vector<8x32xf32>
    %273 = vector.extract_strided_slice %262 {offsets = [0, 64], sizes = [8, 32], strides = [1, 1]} : vector<8x96xf32> to vector<8x32xf32>
    %274 = arith.addf %273, %212 : vector<8x32xf32>
    %275 = vector.extract_strided_slice %261 {offsets = [0, 64], sizes = [8, 32], strides = [1, 1]} : vector<8x96xf32> to vector<8x32xf32>
    %276 = arith.mulf %271, %274 : vector<8x32xf32>
    %277 = arith.addf %275, %276 : vector<8x32xf32>
    %278 = math.tanh %277 : vector<8x32xf32>
    %cst_60 = arith.constant 1.000000e+00 : f32
    %279 = vector.broadcast %cst_60 : f32 to vector<8x32xf32>
    %280 = arith.subf %279, %272 : vector<8x32xf32>
    %281 = arith.mulf %280, %278 : vector<8x32xf32>
    %282 = arith.mulf %272, %260 : vector<8x32xf32>
    %283 = arith.addf %281, %282 : vector<8x32xf32>
    %284 = vector.extract_strided_slice %209 {offsets = [24, 0], sizes = [8, 96], strides = [1, 1]} : vector<64x96xf32> to vector<8x96xf32>
    %cst_61 = arith.constant dense<0.000000e+00> : vector<8x96xf32>
    %285 = tpu.matmul %283, %204, %cst_61 {dimension_numbers = #tpu.dot_dimension_numbers<[1], [0], [0], [1], [0, 0, 1, 1], [], []>} : vector<8x32xf32>, vector<32x96xf32>, vector<8x96xf32> -> vector<8x96xf32>
    %286 = vector.extract_strided_slice %284 {offsets = [0, 0], sizes = [8, 64], strides = [1, 1]} : vector<8x96xf32> to vector<8x64xf32>
    %287 = vector.extract_strided_slice %285 {offsets = [0, 0], sizes = [8, 64], strides = [1, 1]} : vector<8x96xf32> to vector<8x64xf32>
    %288 = arith.addf %286, %287 : vector<8x64xf32>
    %289 = arith.negf %288 : vector<8x64xf32>
    %290 = math.exp %289 : vector<8x64xf32>
    %cst_62 = arith.constant 1.000000e+00 : f32
    %291 = vector.broadcast %cst_62 : f32 to vector<8x64xf32>
    %292 = arith.addf %291, %290 : vector<8x64xf32>
    %293 = arith.divf %291, %292 : vector<8x64xf32>
    %294 = vector.extract_strided_slice %293 {offsets = [0, 0], sizes = [8, 32], strides = [1, 1]} : vector<8x64xf32> to vector<8x32xf32>
    %295 = vector.extract_strided_slice %293 {offsets = [0, 32], sizes = [8, 32], strides = [1, 1]} : vector<8x64xf32> to vector<8x32xf32>
    %296 = vector.extract_strided_slice %285 {offsets = [0, 64], sizes = [8, 32], strides = [1, 1]} : vector<8x96xf32> to vector<8x32xf32>
    %297 = arith.addf %296, %212 : vector<8x32xf32>
    %298 = vector.extract_strided_slice %284 {offsets = [0, 64], sizes = [8, 32], strides = [1, 1]} : vector<8x96xf32> to vector<8x32xf32>
    %299 = arith.mulf %294, %297 : vector<8x32xf32>
    %300 = arith.addf %298, %299 : vector<8x32xf32>
    %301 = math.tanh %300 : vector<8x32xf32>
    %cst_63 = arith.constant 1.000000e+00 : f32
    %302 = vector.broadcast %cst_63 : f32 to vector<8x32xf32>
    %303 = arith.subf %302, %295 : vector<8x32xf32>
    %304 = arith.mulf %303, %301 : vector<8x32xf32>
    %305 = arith.mulf %295, %283 : vector<8x32xf32>
    %306 = arith.addf %304, %305 : vector<8x32xf32>
    %307 = vector.extract_strided_slice %209 {offsets = [32, 0], sizes = [8, 96], strides = [1, 1]} : vector<64x96xf32> to vector<8x96xf32>
    %cst_64 = arith.constant dense<0.000000e+00> : vector<8x96xf32>
    %308 = tpu.matmul %306, %204, %cst_64 {dimension_numbers = #tpu.dot_dimension_numbers<[1], [0], [0], [1], [0, 0, 1, 1], [], []>} : vector<8x32xf32>, vector<32x96xf32>, vector<8x96xf32> -> vector<8x96xf32>
    %309 = vector.extract_strided_slice %307 {offsets = [0, 0], sizes = [8, 64], strides = [1, 1]} : vector<8x96xf32> to vector<8x64xf32>
    %310 = vector.extract_strided_slice %308 {offsets = [0, 0], sizes = [8, 64], strides = [1, 1]} : vector<8x96xf32> to vector<8x64xf32>
    %311 = arith.addf %309, %310 : vector<8x64xf32>
    %312 = arith.negf %311 : vector<8x64xf32>
    %313 = math.exp %312 : vector<8x64xf32>
    %cst_65 = arith.constant 1.000000e+00 : f32
    %314 = vector.broadcast %cst_65 : f32 to vector<8x64xf32>
    %315 = arith.addf %314, %313 : vector<8x64xf32>
    %316 = arith.divf %314, %315 : vector<8x64xf32>
    %317 = vector.extract_strided_slice %316 {offsets = [0, 0], sizes = [8, 32], strides = [1, 1]} : vector<8x64xf32> to vector<8x32xf32>
    %318 = vector.extract_strided_slice %316 {offsets = [0, 32], sizes = [8, 32], strides = [1, 1]} : vector<8x64xf32> to vector<8x32xf32>
    %319 = vector.extract_strided_slice %308 {offsets = [0, 64], sizes = [8, 32], strides = [1, 1]} : vector<8x96xf32> to vector<8x32xf32>
    %320 = arith.addf %319, %212 : vector<8x32xf32>
    %321 = vector.extract_strided_slice %307 {offsets = [0, 64], sizes = [8, 32], strides = [1, 1]} : vector<8x96xf32> to vector<8x32xf32>
    %322 = arith.mulf %317, %320 : vector<8x32xf32>
    %323 = arith.addf %321, %322 : vector<8x32xf32>
    %324 = math.tanh %323 : vector<8x32xf32>
    %cst_66 = arith.constant 1.000000e+00 : f32
    %325 = vector.broadcast %cst_66 : f32 to vector<8x32xf32>
    %326 = arith.subf %325, %318 : vector<8x32xf32>
    %327 = arith.mulf %326, %324 : vector<8x32xf32>
    %328 = arith.mulf %318, %306 : vector<8x32xf32>
    %329 = arith.addf %327, %328 : vector<8x32xf32>
    %330 = vector.extract_strided_slice %209 {offsets = [40, 0], sizes = [8, 96], strides = [1, 1]} : vector<64x96xf32> to vector<8x96xf32>
    %cst_67 = arith.constant dense<0.000000e+00> : vector<8x96xf32>
    %331 = tpu.matmul %329, %204, %cst_67 {dimension_numbers = #tpu.dot_dimension_numbers<[1], [0], [0], [1], [0, 0, 1, 1], [], []>} : vector<8x32xf32>, vector<32x96xf32>, vector<8x96xf32> -> vector<8x96xf32>
    %332 = vector.extract_strided_slice %330 {offsets = [0, 0], sizes = [8, 64], strides = [1, 1]} : vector<8x96xf32> to vector<8x64xf32>
    %333 = vector.extract_strided_slice %331 {offsets = [0, 0], sizes = [8, 64], strides = [1, 1]} : vector<8x96xf32> to vector<8x64xf32>
    %334 = arith.addf %332, %333 : vector<8x64xf32>
    %335 = arith.negf %334 : vector<8x64xf32>
    %336 = math.exp %335 : vector<8x64xf32>
    %cst_68 = arith.constant 1.000000e+00 : f32
    %337 = vector.broadcast %cst_68 : f32 to vector<8x64xf32>
    %338 = arith.addf %337, %336 : vector<8x64xf32>
    %339 = arith.divf %337, %338 : vector<8x64xf32>
    %340 = vector.extract_strided_slice %339 {offsets = [0, 0], sizes = [8, 32], strides = [1, 1]} : vector<8x64xf32> to vector<8x32xf32>
    %341 = vector.extract_strided_slice %339 {offsets = [0, 32], sizes = [8, 32], strides = [1, 1]} : vector<8x64xf32> to vector<8x32xf32>
    %342 = vector.extract_strided_slice %331 {offsets = [0, 64], sizes = [8, 32], strides = [1, 1]} : vector<8x96xf32> to vector<8x32xf32>
    %343 = arith.addf %342, %212 : vector<8x32xf32>
    %344 = vector.extract_strided_slice %330 {offsets = [0, 64], sizes = [8, 32], strides = [1, 1]} : vector<8x96xf32> to vector<8x32xf32>
    %345 = arith.mulf %340, %343 : vector<8x32xf32>
    %346 = arith.addf %344, %345 : vector<8x32xf32>
    %347 = math.tanh %346 : vector<8x32xf32>
    %cst_69 = arith.constant 1.000000e+00 : f32
    %348 = vector.broadcast %cst_69 : f32 to vector<8x32xf32>
    %349 = arith.subf %348, %341 : vector<8x32xf32>
    %350 = arith.mulf %349, %347 : vector<8x32xf32>
    %351 = arith.mulf %341, %329 : vector<8x32xf32>
    %352 = arith.addf %350, %351 : vector<8x32xf32>
    %353 = vector.extract_strided_slice %209 {offsets = [48, 0], sizes = [8, 96], strides = [1, 1]} : vector<64x96xf32> to vector<8x96xf32>
    %cst_70 = arith.constant dense<0.000000e+00> : vector<8x96xf32>
    %354 = tpu.matmul %352, %204, %cst_70 {dimension_numbers = #tpu.dot_dimension_numbers<[1], [0], [0], [1], [0, 0, 1, 1], [], []>} : vector<8x32xf32>, vector<32x96xf32>, vector<8x96xf32> -> vector<8x96xf32>
    %355 = vector.extract_strided_slice %353 {offsets = [0, 0], sizes = [8, 64], strides = [1, 1]} : vector<8x96xf32> to vector<8x64xf32>
    %356 = vector.extract_strided_slice %354 {offsets = [0, 0], sizes = [8, 64], strides = [1, 1]} : vector<8x96xf32> to vector<8x64xf32>
    %357 = arith.addf %355, %356 : vector<8x64xf32>
    %358 = arith.negf %357 : vector<8x64xf32>
    %359 = math.exp %358 : vector<8x64xf32>
    %cst_71 = arith.constant 1.000000e+00 : f32
    %360 = vector.broadcast %cst_71 : f32 to vector<8x64xf32>
    %361 = arith.addf %360, %359 : vector<8x64xf32>
    %362 = arith.divf %360, %361 : vector<8x64xf32>
    %363 = vector.extract_strided_slice %362 {offsets = [0, 0], sizes = [8, 32], strides = [1, 1]} : vector<8x64xf32> to vector<8x32xf32>
    %364 = vector.extract_strided_slice %362 {offsets = [0, 32], sizes = [8, 32], strides = [1, 1]} : vector<8x64xf32> to vector<8x32xf32>
    %365 = vector.extract_strided_slice %354 {offsets = [0, 64], sizes = [8, 32], strides = [1, 1]} : vector<8x96xf32> to vector<8x32xf32>
    %366 = arith.addf %365, %212 : vector<8x32xf32>
    %367 = vector.extract_strided_slice %353 {offsets = [0, 64], sizes = [8, 32], strides = [1, 1]} : vector<8x96xf32> to vector<8x32xf32>
    %368 = arith.mulf %363, %366 : vector<8x32xf32>
    %369 = arith.addf %367, %368 : vector<8x32xf32>
    %370 = math.tanh %369 : vector<8x32xf32>
    %cst_72 = arith.constant 1.000000e+00 : f32
    %371 = vector.broadcast %cst_72 : f32 to vector<8x32xf32>
    %372 = arith.subf %371, %364 : vector<8x32xf32>
    %373 = arith.mulf %372, %370 : vector<8x32xf32>
    %374 = arith.mulf %364, %352 : vector<8x32xf32>
    %375 = arith.addf %373, %374 : vector<8x32xf32>
    %376 = vector.extract_strided_slice %209 {offsets = [56, 0], sizes = [8, 96], strides = [1, 1]} : vector<64x96xf32> to vector<8x96xf32>
    %cst_73 = arith.constant dense<0.000000e+00> : vector<8x96xf32>
    %377 = tpu.matmul %375, %204, %cst_73 {dimension_numbers = #tpu.dot_dimension_numbers<[1], [0], [0], [1], [0, 0, 1, 1], [], []>} : vector<8x32xf32>, vector<32x96xf32>, vector<8x96xf32> -> vector<8x96xf32>
    %378 = vector.extract_strided_slice %376 {offsets = [0, 0], sizes = [8, 64], strides = [1, 1]} : vector<8x96xf32> to vector<8x64xf32>
    %379 = vector.extract_strided_slice %377 {offsets = [0, 0], sizes = [8, 64], strides = [1, 1]} : vector<8x96xf32> to vector<8x64xf32>
    %380 = arith.addf %378, %379 : vector<8x64xf32>
    %381 = arith.negf %380 : vector<8x64xf32>
    %382 = math.exp %381 : vector<8x64xf32>
    %cst_74 = arith.constant 1.000000e+00 : f32
    %383 = vector.broadcast %cst_74 : f32 to vector<8x64xf32>
    %384 = arith.addf %383, %382 : vector<8x64xf32>
    %385 = arith.divf %383, %384 : vector<8x64xf32>
    %386 = vector.extract_strided_slice %385 {offsets = [0, 0], sizes = [8, 32], strides = [1, 1]} : vector<8x64xf32> to vector<8x32xf32>
    %387 = vector.extract_strided_slice %385 {offsets = [0, 32], sizes = [8, 32], strides = [1, 1]} : vector<8x64xf32> to vector<8x32xf32>
    %388 = vector.extract_strided_slice %377 {offsets = [0, 64], sizes = [8, 32], strides = [1, 1]} : vector<8x96xf32> to vector<8x32xf32>
    %389 = arith.addf %388, %212 : vector<8x32xf32>
    %390 = vector.extract_strided_slice %376 {offsets = [0, 64], sizes = [8, 32], strides = [1, 1]} : vector<8x96xf32> to vector<8x32xf32>
    %391 = arith.mulf %386, %389 : vector<8x32xf32>
    %392 = arith.addf %390, %391 : vector<8x32xf32>
    %393 = math.tanh %392 : vector<8x32xf32>
    %cst_75 = arith.constant 1.000000e+00 : f32
    %394 = vector.broadcast %cst_75 : f32 to vector<8x32xf32>
    %395 = arith.subf %394, %387 : vector<8x32xf32>
    %396 = arith.mulf %395, %393 : vector<8x32xf32>
    %397 = arith.mulf %387, %375 : vector<8x32xf32>
    %398 = arith.addf %396, %397 : vector<8x32xf32>
    %c1_76 = arith.constant 1 : index
    %c0_77 = arith.constant 0 : index
    %c0_78 = arith.constant 0 : index
    %399 = vector.load %arg13[%c1_76, %c0_77, %c0_78] : memref<2x8x32xf32, #tpu.memory_space<vmem>>, vector<1x8x32xf32>
    %400 = vector.shape_cast %399 : vector<1x8x32xf32> to vector<8x32xf32>
    %401 = vector.shape_cast %398 : vector<8x32xf32> to vector<1x8x32xf32>
    tpu.vector_store %arg13[%c1_76, %c0_77, %c0_78], %401 {strides = array<i32>} : memref<2x8x32xf32, #tpu.memory_space<vmem>>, vector<1x8x32xf32>,
    %402 = tpu.concatenate %237, %260, %283, %306, %329, %352, %375, %398 in 0 : vector<8x32xf32>, vector<8x32xf32>, vector<8x32xf32>, vector<8x32xf32>, vector<8x32xf32>, vector<8x32xf32>, vector<8x32xf32>, vector<8x32xf32> -> vector<64x32xf32>
    %c0_79 = arith.constant 0 : index
    %c0_80 = arith.constant 0 : index
    %403 = vector.load %arg10[%c0_79, %c0_80] : memref<32x32xf32, #tpu.memory_space<vmem>>, vector<32x32xf32>
    %cst_81 = arith.constant dense<0.000000e+00> : vector<64x32xf32>
    %404 = tpu.matmul %402, %403, %cst_81 {dimension_numbers = #tpu.dot_dimension_numbers<[1], [0], [0], [1], [0, 0, 1, 1], [], []>} : vector<64x32xf32>, vector<32x32xf32>, vector<64x32xf32> -> vector<64x32xf32>
    %c0_82 = arith.constant 0 : index
    %c0_83 = arith.constant 0 : index
    %405 = vector.load %arg11[%c0_82, %c0_83] : memref<1x32xf32, #tpu.memory_space<vmem>>, vector<1x32xf32>
    %406 = vector.broadcast %405 : vector<1x32xf32> to vector<64x32xf32>
    %407 = arith.addf %404, %406 : vector<64x32xf32>
    %408 = math.absf %407 : vector<64x32xf32>
    %cst_84 = arith.constant 1.000000e-01 : f32
    %409 = vector.broadcast %cst_84 : f32 to vector<64x32xf32>
    %410 = arith.cmpf oge, %408, %409 : vector<64x32xf32>
    %411 = arith.extui %410 : vector<64x32xi1> to vector<64x32xi32>
    %412 = arith.sitofp %411 : vector<64x32xi32> to vector<64x32xf32>
    %cst_85 = arith.constant 5.000000e-02 : f32
    %413 = vector.broadcast %cst_85 : f32 to vector<64x32xf32>
    %414 = arith.subf %408, %413 : vector<64x32xf32>
    %415 = arith.mulf %412, %414 : vector<64x32xf32>
    %cst_86 = arith.constant 1.000000e+00 : f32
    %416 = vector.broadcast %cst_86 : f32 to vector<64x32xf32>
    %417 = arith.subf %416, %412 : vector<64x32xf32>
    %418 = arith.mulf %407, %407 : vector<64x32xf32>
    %cst_87 = arith.constant 5.000000e+00 : f32
    %419 = vector.broadcast %cst_87 : f32 to vector<64x32xf32>
    %420 = arith.mulf %418, %419 : vector<64x32xf32>
    %421 = arith.mulf %417, %420 : vector<64x32xf32>
    %422 = arith.addf %415, %421 : vector<64x32xf32>
    %c0_88 = arith.constant 0 : index
    %c0_89 = arith.constant 0 : index
    %423 = vector.load %arg12[%c0_88, %c0_89] : memref<64x32xf32, #tpu.memory_space<vmem>>, vector<64x32xf32>
    tpu.vector_store %arg12[%c0_88, %c0_89], %422 {strides = array<i32>} : memref<64x32xf32, #tpu.memory_space<vmem>>, vector<64x32xf32>,
    return
  }
  func.func @transform_0(%arg0: i32) -> (i32, i32, i32) {
    %c0_i32 = arith.constant 0 : i32
    %c0_i32_0 = arith.constant 0 : i32
    %c0_i32_1 = arith.constant 0 : i32
    return %arg0, %c0_i32, %c0_i32_0 : i32, i32, i32
  }
  func.func @transform_1(%arg0: i32) -> (i32, i32) {
    %c0_i32 = arith.constant 0 : i32
    %c0_i32_0 = arith.constant 0 : i32
    %c0_i32_1 = arith.constant 0 : i32
    return %c0_i32, %c0_i32_0 : i32, i32
  }
  func.func @transform_2(%arg0: i32) -> (i32, i32) {
    %c0_i32 = arith.constant 0 : i32
    %c0_i32_0 = arith.constant 0 : i32
    %c0_i32_1 = arith.constant 0 : i32
    return %c0_i32, %c0_i32_0 : i32, i32
  }
  func.func @transform_3(%arg0: i32) -> (i32, i32) {
    %c0_i32 = arith.constant 0 : i32
    %c0_i32_0 = arith.constant 0 : i32
    %c0_i32_1 = arith.constant 0 : i32
    return %c0_i32, %c0_i32_0 : i32, i32
  }
  func.func @transform_4(%arg0: i32) -> (i32, i32) {
    %c0_i32 = arith.constant 0 : i32
    %c0_i32_0 = arith.constant 0 : i32
    %c0_i32_1 = arith.constant 0 : i32
    return %c0_i32, %c0_i32_0 : i32, i32
  }
  func.func @transform_5(%arg0: i32) -> (i32, i32) {
    %c0_i32 = arith.constant 0 : i32
    %c0_i32_0 = arith.constant 0 : i32
    %c0_i32_1 = arith.constant 0 : i32
    return %c0_i32, %c0_i32_0 : i32, i32
  }
  func.func @transform_6(%arg0: i32) -> (i32, i32) {
    %c0_i32 = arith.constant 0 : i32
    %c0_i32_0 = arith.constant 0 : i32
    %c0_i32_1 = arith.constant 0 : i32
    return %c0_i32, %c0_i32_0 : i32, i32
  }
  func.func @transform_7(%arg0: i32) -> (i32, i32) {
    %c0_i32 = arith.constant 0 : i32
    %c0_i32_0 = arith.constant 0 : i32
    %c0_i32_1 = arith.constant 0 : i32
    return %c0_i32, %c0_i32_0 : i32, i32
  }
  func.func @transform_8(%arg0: i32) -> (i32, i32) {
    %c0_i32 = arith.constant 0 : i32
    %c0_i32_0 = arith.constant 0 : i32
    %c0_i32_1 = arith.constant 0 : i32
    return %c0_i32, %c0_i32_0 : i32, i32
  }
  func.func @transform_9(%arg0: i32) -> (i32, i32) {
    %c0_i32 = arith.constant 0 : i32
    %c0_i32_0 = arith.constant 0 : i32
    %c0_i32_1 = arith.constant 0 : i32
    return %c0_i32, %c0_i32_0 : i32, i32
  }
  func.func @transform_10(%arg0: i32) -> (i32, i32) {
    %c0_i32 = arith.constant 0 : i32
    %c0_i32_0 = arith.constant 0 : i32
    %c0_i32_1 = arith.constant 0 : i32
    return %c0_i32, %c0_i32_0 : i32, i32
  }
  func.func @transform_11(%arg0: i32) -> (i32, i32) {
    %c0_i32 = arith.constant 0 : i32
    %c0_i32_0 = arith.constant 0 : i32
    return %arg0, %c0_i32 : i32, i32
  }
}

</mosaic_0001>

<bundles_post_ra>
// kernel: tpu_custom_call.1
= control target key start
LH: loop header
LB: loop body
LE: loop exit
PB: predicated region body
PF: predicated region fallthrough
CT: control target
= control target key end

     0   :  { %16 = vsyncpa [#allocation4], 0  ;;  %s3527_s0 = inlined_call_operand.hbm [shape: f32[8,8,16], index: 0, kind: input, shape index: {}]   ;;  %s3528_s1 = inlined_call_operand.hbm [shape: f32[16,96], index: 1, kind: input, shape index: {}]   ;;  %s3529_s2 = inlined_call_operand.hbm [shape: f32[32,96], index: 2, kind: input, shape index: {}]   ;;  %s3530_s3 = inlined_call_operand.vmem [shape: f32[1,96], index: 3, kind: input, shape index: {}]   ;;  %s3531_s4 = inlined_call_operand.vmem [shape: f32[1,32], index: 4, kind: input, shape index: {}]   ;;  %s3532_s5 = inlined_call_operand.hbm [shape: f32[32,96], index: 5, kind: input, shape index: {}]   ;;  %s3533_s6 = inlined_call_operand.hbm [shape: f32[32,96], index: 6, kind: input, shape index: {}]   ;;  %s3534_s7 = inlined_call_operand.vmem [shape: f32[1,96], index: 7, kind: input, shape index: {}]   ;;  %s3535_s8 = inlined_call_operand.vmem [shape: f32[1,32], index: 8, kind: input, shape index: {}]   ;;  %s3536_s9 = inlined_call_operand.hbm [shape: f32[32,32], index: 9, kind: input, shape index: {}]   ;;  %s3537_s10 = inlined_call_operand.vmem [shape: f32[1,32], index: 10, kind: input, shape index: {}]   ;;  %s3538_s11 = inlined_call_operand.vmem [shape: f32[64,32], index: 11, kind: output, shape index: {}]  }
   0x1   :  { %17 = vsyncpa [#allocation6], 0 }
   0x2   :  { %18 = vsyncpa [#allocation9], 0 }
   0x3   :  { %19 = vsyncpa [#allocation12], 0  ;;  %s2952_s17 = smov [#allocation5]   ;;  %s2953_s19 = smov [#allocation8]  }
   0x4   :  { %s37_s18 = sshll.u32 %s2952_s17, 4  ;;  %s65_s20 = sshll.u32 %s2953_s19, 4  ;;  %s38_s18 = int_to_ptr.vmem [resolvable:$true] %s37_s18  ;;  %s66_s20 = int_to_ptr.vmem [resolvable:$true] %s65_s20 }
   0x5   :  { %s2832_s21 = scalar_lea.vmem %s38_s18, 256  ;;  %p2837_p1 = scmp.lt.s32.totalorder %s38_s18, %s38_s18 }
   0x6   :  { %p2833_p0 = scmp.ne.s32.totalorder %s38_s18, %s2832_s21  ;;  %p2838_p2 = scmp.lt.s32.totalorder %s2832_s21, %s2832_s21 }
   0x8   :  { %p2839_p3 = por %p2838_p2, %p2837_p1 }
   0xa   :  { %p2840_p4 = pnand %p2839_p3, %p2833_p0 }
   0xc   :  { %2843 = shalt.err (!%p2840_p4)
}
   0xd   :  { %s2954_s22 = smov 128   ;;  %s2955_s23 = smov 8  }
   0xe   :  { %43 = dma.hbm_to_vmem [thread:$0]  %s3528_s1, 256, %s38_s18, [#allocation6], %s2954_s22, %s2954_s22, %s2955_s23  }
   0xf   :  { %s2852_s26 = scalar_lea.vmem %s66_s20, 512  ;;  %p2857_p6 = scmp.lt.s32.totalorder %s66_s20, %s66_s20 }
  0x10   :  { %p2853_p5 = scmp.ne.s32.totalorder %s66_s20, %s2852_s26  ;;  %p2858_p7 = scmp.lt.s32.totalorder %s2852_s26, %s2852_s26 }
  0x12   :  { %p2859_p8 = por %p2858_p7, %p2857_p6 }
  0x14   :  { %p2860_p9 = pnand %p2859_p8, %p2853_p5 }
  0x16   :  { %2863 = shalt.err (!%p2860_p9)
}
  0x17   :  { %71 = dma.hbm_to_vmem [thread:$0]  %s3532_s5, 512, %s66_s20, [#allocation9], %s2954_s22, %s2954_s22, %s2955_s23  }
  0x18   :  { %s2956_s29 = smov [#allocation3]   ;;  %s2957_s12 = smov [#allocation7]  }
  0x19   :  { %s25_s30 = sshll.u32 %s2956_s29, 4  ;;  %s49_s13 = sshll.u32 %s2957_s12, 4  ;;  %s26_s30 = int_to_ptr.vmem [resolvable:$true] %s25_s30  ;;  %s50_s13 = int_to_ptr.vmem [resolvable:$true] %s49_s13 }
  0x1a   :  { %s2872_s1 = scalar_lea.vmem %s26_s30, 1024  ;;  %p2877_p11 = scmp.lt.s32.totalorder %s26_s30, %s26_s30 }
  0x1b   :  { %p2873_p10 = scmp.ne.s32.totalorder %s26_s30, %s2872_s1  ;;  %p2878_p12 = scmp.lt.s32.totalorder %s2872_s1, %s2872_s1 }
  0x1d   :  { %p2879_p13 = por %p2878_p12, %p2877_p11 }
  0x1f   :  { %p2880_p0 = pnand %p2879_p13, %p2873_p10 }
  0x21   :  { %2883 = shalt.err (!%p2880_p0)
}
  0x22   :  { %31 = dma.hbm_to_vmem [thread:$0]  %s3527_s0, 1024, %s26_s30, [#allocation4], %s2954_s22, %s2954_s22, %s2955_s23  }
  0x23   :  { %s2892_s5 = scalar_lea.vmem %s50_s13, 512  ;;  %p2897_p2 = scmp.lt.s32.totalorder %s50_s13, %s50_s13 }
  0x24   :  { %p2893_p1 = scmp.ne.s32.totalorder %s50_s13, %s2892_s5  ;;  %p2898_p3 = scmp.lt.s32.totalorder %s2892_s5, %s2892_s5 }
  0x26   :  { %p2899_p4 = por %p2898_p3, %p2897_p2 }
  0x28   :  { %p2900_p5 = pnand %p2899_p4, %p2893_p1 }
  0x2a   :  { %2903 = shalt.err (!%p2900_p5)
}
  0x2b   :  { %55 = dma.hbm_to_vmem [thread:$0]  %s3529_s2, 512, %s50_s13, [#allocation6], %s2954_s22, %s2954_s22, %s2955_s23  }
  0x2c   :  { %s2958_s18 = smov [#allocation10]   ;;  %s2959_s20 = smov [#allocation11]  }
  0x2d   :  { %s77_s19 = sshll.u32 %s2958_s18, 4  ;;  %s93_s21 = sshll.u32 %s2959_s20, 4  ;;  %s78_s19 = int_to_ptr.vmem [resolvable:$true] %s77_s19  ;;  %s94_s21 = int_to_ptr.vmem [resolvable:$true] %s93_s21 }
  0x2e   :  { %s2912_s0 = scalar_lea.vmem %s78_s19, 512  ;;  %p2917_p7 = scmp.lt.s32.totalorder %s78_s19, %s78_s19 }
  0x2f   :  { %p2913_p6 = scmp.ne.s32.totalorder %s78_s19, %s2912_s0  ;;  %p2918_p8 = scmp.lt.s32.totalorder %s2912_s0, %s2912_s0 }
  0x31   :  { %p2919_p9 = por %p2918_p8, %p2917_p7 }
  0x33   :  { %p2920_p10 = pnand %p2919_p9, %p2913_p6 }
  0x35   :  { %2923 = shalt.err (!%p2920_p10)
}
  0x36   :  { %83 = dma.hbm_to_vmem [thread:$0]  %s3533_s6, 512, %s78_s19, [#allocation9], %s2954_s22, %s2954_s22, %s2955_s23  }
  0x37   :  { %s2932_s2 = scalar_lea.vmem %s94_s21, 512  ;;  %p2937_p12 = scmp.lt.s32.totalorder %s94_s21, %s94_s21 }
  0x38   :  { %p2933_p11 = scmp.ne.s32.totalorder %s94_s21, %s2932_s2  ;;  %p2938_p13 = scmp.lt.s32.totalorder %s2932_s2, %s2932_s2 }
  0x3a   :  { %p2939_p0 = por %p2938_p13, %p2937_p12 }
  0x3c   :  { %p2940_p1 = pnand %p2939_p0, %p2933_p11 }
  0x3e   :  { %2943 = shalt.err (!%p2940_p1)
}
  0x3f   :  { %99 = dma.hbm_to_vmem [thread:$0]  %s3536_s9, 512, %s94_s21, [#allocation12], %s2954_s22, %s2954_s22, %s2955_s23  }
  0x40   :  { %2944 = dma.done.wait [#allocation4], 1024  }
  0x41   :  { %2945 = vsyncadd [#allocation4], 4294966272 }
  0x42   :  { %2946 = dma.done.wait [#allocation6], 768  }
  0x43   :  { %2947 = vsyncadd [#allocation6], 4294966528 }
  0x44   :  { %2948 = dma.done.wait [#allocation9], 1024  }
  0x45   :  { %2949 = vsyncadd [#allocation9], 4294966272 }
  0x46   :  { %2950 = dma.done.wait [#allocation12], 512  }
  0x47   :  { %2951 = vsyncadd [#allocation12], 4294966784  ;;  %vm124_vm0 = vcmask 261120   ;;  %v2960_v0 = vmov 0.0   ;;  %vm148_vm1 = vcmask 130048   ;;  %v140_v1 = vld [vmem:[#allocation5 + $0x8] sm:$0xff] }
  0x48   :  { %125 = vst.msk [vmem:[#allocation2] sm:$0xff] %vm124_vm0, %v2960_v0  ;;  %126 = vst.msk [vmem:[#allocation2 + $0x8] sm:$0xff] %vm124_vm0, %v2960_v0  ;;  %v139_v2 = vld [vmem:[#allocation5] sm:$0xff]  ;;  %2711 = vmatprep.subr.mxu1 %v140_v1  ;;  %v132_v4 = vld [vmem:[#allocation3 + $0x28] sm:$0xff]  ;;  %2479 = vmatprep.subr.mxu0 %v140_v1  ;;  %vm2961_vm2 = vmmov 0   ;;  %s2962_s22 = smov 64  }
  0x49   :  { %v131_v3 = vld [vmem:[#allocation3 + $0x20] sm:$0xff]  ;;  %2713 = vmatpush3.msra.mxu1 %v140_v1  ;;  %v3066_v5 = vld [vmem:[#allocation7 + $0x18] sm:$0xff]  ;;  %2480 = vmatpush3.msra.mxu0 %v140_v1  ;;  %v133_v6 = vld [vmem:[#allocation3 + $0x30] sm:$0xff]  ;;  %s2964_s29 = smov 96  }
  0x4a   :  { %2489 = vmatprep.mubr.msk.f32.mxu1 %vm148_vm1, %v131_v3  ;;  %2712 = vmatprep.subr.mxu1 %v139_v2  ;;  %v3070_v7 = vld [vmem:[#allocation7 + $0x10] sm:$0xff]  ;;  %v134_v9 = vld [vmem:[#allocation3 + $0x38] sm:$0xff]  ;;  %v128_v10 = vld [vmem:[#allocation3 + $0x8] sm:$0xff] }
  0x4b   :  { %2714 = vmatpush3.msra.mxu1 %v139_v2  ;;  %2481 = vmatprep.subr.mxu0 %v139_v2  ;;  %v127_v8 = vld [vmem:[#allocation3] sm:$0xff]  ;;  %v3075_v11 = vld [vmem:[#allocation7 + $0x8] sm:$0xff]  ;;  %v3081_v12 = vld [vmem:[#allocation7] sm:$0xff] }
  0x4c   :  { %2490 = vmatmul.mubr.msk.f32.vlgmr.msra.gmra.mxu1 %vm148_vm1, %v132_v4  ;;  %2495 = vmatprep.subr.mxu1 %v2960_v0  ;;  %v2297_v13 = vld [vmem:[%s3531_s4] ss:$0 sm:$0xff]  ;;  %s2963_s4 = smov 32   ;;  %v130_v58 = vld [vmem:[#allocation3 + $0x18] sm:$0xff] }
  0x4d   :  { %2496 = vmatpush3.msra.mxu1 %v3066_v5  ;;  %2492 = vmatprep.mubr.msk.f32.mxu1 %vm148_vm1, %v133_v6  ;;  %v3130_v25 = vld [vmem:[%s3530_s3] ss:$0 sm:$0xff] }
  0x4e   :  { %2497 = vmatprep.subr.mxu1 %v2960_v0  ;;  %2482 = vmatpush3.msra.mxu0 %v139_v2  ;;  %v129_v57 = vld [vmem:[#allocation3 + $0x10] sm:$0xff] }
  0x4f   :  { %2498 = vmatpush3.msra.mxu1 %v3070_v7  ;;  %2483 = vmatprep.mubr.msk.f32.mxu0 %vm148_vm1, %v127_v8  ;;  %v284_v14 = vld [vmem:[#allocation2] sm:$0xff] }
  0x50   :  { %2493 = vmatmul.mubr.msk.f32.gmra.mxu1 %vm148_vm1, %v134_v9  ;;  %2499 = vmatprep.subr.mxu1 %v2960_v0 }
  0x51   :  { %2484 = vmatmul.mubr.msk.f32.vlgmr.msra.gmra.mxu0 %vm148_vm1, %v128_v10  ;;  %2500 = vmatpush3.msra.mxu1 %v3075_v11 }
  0x52   :  { %2501 = vmatprep.subr.mxu1 %v2960_v0  ;;  %2503 = vmatprep.mubr.msk.f32.mxu1 %vm2961_vm2, %v2960_v0 }
  0x53   :  { %2502 = vmatpush3.msra.mxu1 %v3081_v12  ;;  %366 = vrot.lane.b32.xlu0 %v2297_v13, %s2962_s22 }
  0x54   :  { %2504 = vmatmul.mubr.msk.f32.vlgmr.msra.gmra.mxu1 %vm124_vm0, %v284_v14  ;;  %2506 = vmatprep.subr.mxu1 %v2960_v0 }
  0x55   :  { %2507 = vmatpush3.msra.mxu1 %v3066_v5  ;;  %2514 = vmatprep.mubr.msk.f32.mxu1 %vm2961_vm2, %v2960_v0 }
  0x56   :  { %2508 = vmatprep.subr.mxu1 %v2960_v0  ;;  %2517 = vmatprep.subr.mxu0 %v2960_v0 }
  0x57   :  { %2509 = vmatpush3.msra.mxu1 %v3070_v7  ;;  %2518 = vmatpush3.msra.mxu0 %v3066_v5 }
  0x58   :  { %2510 = vmatprep.subr.mxu1 %v2960_v0  ;;  %2519 = vmatprep.subr.mxu0 %v2960_v0 }
  0x59   :  { %2511 = vmatpush3.msra.mxu1 %v3075_v11  ;;  %2520 = vmatpush3.msra.mxu0 %v3070_v7 }
  0x5a   :  { %2512 = vmatprep.subr.mxu1 %v2960_v0  ;;  %2521 = vmatprep.subr.mxu0 %v2960_v0 }
  0x5b   :  { %2513 = vmatpush3.msra.mxu1 %v3081_v12  ;;  %2522 = vmatpush3.msra.mxu0 %v3075_v11 }
  0x5c   :  { %2523 = vmatprep.subr.mxu0 %v2960_v0  ;;  %2528 = vmatprep.subr.mxu1 %v2960_v0 }
  0x5d   :  { %2524 = vmatpush3.msra.mxu0 %v3081_v12  ;;  %2486 = vmatprep.mubr.msk.f32.mxu0 %vm148_vm1, %v129_v57 }
  0x5e   :  { %2539 = vmatprep.subr.mxu0 %v2960_v0  ;;  %2487 = vmatmul.mubr.msk.f32.gmra.mxu0 %vm148_vm1, %v130_v58 }
  0x5f   :  { %2525 = vmatprep.mubr.msk.f32.mxu0 %vm2961_vm2, %v2960_v0 }
  0xc5   :  { %v3122_v19 = vpop.permute.xlu0 %366 }
 0x10c   :  { %v3114_v15 = vpop.f32.mrf.mxu1 }
 0x10e   :  { %v3116_v16 = vpop.f32.mrf.mxu1 }
 0x110   :  { %v3118_v17 = vpop.f32.mrf.mxu1 }
 0x111   :  { %v2485_v23 = vpop.f32.mrf.mxu0 }
 0x112   :  { %v3120_v18 = vpop.f32.mrf.mxu1  ;;  %v245_v47 = vadd.f32 %v2485_v23, %v3130_v25 }
 0x113   :  { %v239_v24 = vpop.f32.mrf.mxu0 }
 0x114   :  { %v355_v20 = vpop.f32.mrf.mxu1  ;;  %v240_v26 = vadd.f32 %v3130_v25, %v239_v24 }
 0x115   :  { %v369_v21 = vadd.f32 %v3122_v19, %v355_v20 }
 0x116   :  { %v2505_v22 = vpop.f32.mrf.mxu1  ;;  %v359_v27 = vadd.f32 %v355_v20, %v240_v26 }
 0x117   :  { %371 = vrot.lane.b32.xlu0 %v369_v21, %s2962_s22 }
 0x118   :  { %v2299_v28 = vmul.f32 -1.442695, %v359_v27 }
 0x11a   :  { %2728 = vpow2.f32 %v2299_v28 }
 0x11b   :  { %387 = vrot.lane.b32.xlu0 %v284_v14, %s2963_s4 }
 0x11e   :  { %v2488_v3 = vpop.f32.mrf.mxu0 }
 0x120   :  { %v249_v4 = vpop.f32.mrf.mxu0 }
 0x121   :  { %v250_v10 = vadd.f32 %v3130_v25, %v249_v4 }
 0x127   :  { %v2729_v29 = vpop.eup %2728 }
 0x128   :  { %v363_v30 = vadd.f32 1.0, %v2729_v29 }
 0x12a   :  { %2730 = vrcp.f32 %v363_v30 }
 0x137   :  { %v2731_v31 = vpop.eup %2730 }
 0x138   :  { %v381_v38 = vsub.f32 1.0, %v2731_v31 }
 0x189   :  { %v372_v32 = vpop.permute.xlu0 %371 }
 0x18a   :  { %v374_v33 = vmul.f32 %v2731_v31, %v372_v32 }
 0x18c   :  { %376 = vrot.lane.b32.xlu1 %v374_v33, %s2962_s22 }
 0x18d   :  { %v388_v37 = vpop.permute.xlu0 %387 }
 0x18e   :  { %v390_v40 = vmul.f32 %v2731_v31, %v388_v37 }
 0x1fe   :  { %v377_v34 = vpop.permute.xlu1 %376 }
 0x1ff   :  { %v379_v35 = vadd.f32 %v377_v34, %v240_v26 }
 0x201   :  { %2732 = vtanh.f32 %v379_v35 }
 0x20e   :  { %v2733_v36 = vpop.eup %2732 }
 0x20f   :  { %383 = vrot.lane.b32.xlu1 %v2733_v36, %s2964_s29 }
 0x281   :  { %v384_v39 = vpop.permute.xlu1 %383 }
 0x282   :  { %v386_v41 = vmul.f32 %v384_v39, %v381_v38  ;;  %v255_v38 = vadd.f32 %v2488_v3, %v3130_v25 }
 0x284   :  { %v391_v42 = vadd.f32 %v390_v40, %v386_v41 }
 0x286   :  { %393 = vrot.lane.b32.xlu1 %v391_v42, %s2964_s29 }
 0x2f8   :  { %v3136_v43 = vpop.permute.xlu1 %393 }
 0x2f9   :  { %2515 = vmatmul.mubr.msk.f32.vlgmr.msra.gmra.mxu1 %vm124_vm0, %v3136_v43 }
 0x2fa   :  { %2529 = vmatpush3.msra.mxu1 %v3066_v5  ;;  %2536 = vmatprep.mubr.msk.f32.mxu1 %vm2961_vm2, %v2960_v0 }
 0x2fb   :  { %2530 = vmatprep.subr.mxu1 %v2960_v0 }
 0x2fc   :  { %2531 = vmatpush3.msra.mxu1 %v3070_v7 }
 0x2fd   :  { %2532 = vmatprep.subr.mxu1 %v2960_v0 }
 0x2fe   :  { %2533 = vmatpush3.msra.mxu1 %v3075_v11 }
 0x2ff   :  { %2534 = vmatprep.subr.mxu1 %v2960_v0 }
 0x300   :  { %2535 = vmatpush3.msra.mxu1 %v3081_v12 }
 0x301   :  { %2550 = vmatprep.subr.mxu1 %v2960_v0 }
 0x3b9   :  { %v463_v44 = vpop.f32.mrf.mxu1 }
 0x3ba   :  { %v474_v45 = vadd.f32 %v463_v44, %v3122_v19  ;;  %v467_v48 = vadd.f32 %v463_v44, %v245_v47 }
 0x3bb   :  { %v2516_v46 = vpop.f32.mrf.mxu1 }
 0x3bc   :  { %476 = vrot.lane.b32.xlu0 %v474_v45, %s2962_s22  ;;  %v2301_v49 = vmul.f32 -1.442695, %v467_v48 }
 0x3be   :  { %2734 = vpow2.f32 %v2301_v49 }
 0x3cb   :  { %v2735_v50 = vpop.eup %2734 }
 0x3cc   :  { %v471_v51 = vadd.f32 1.0, %v2735_v50 }
 0x3ce   :  { %2736 = vrcp.f32 %v471_v51 }
 0x3db   :  { %v2737_v52 = vpop.eup %2736 }
 0x3dc   :  { %v486_v60 = vsub.f32 1.0, %v2737_v52  ;;  %v492_v62 = vmul.f32 %v2737_v52, %v391_v42 }
 0x42e   :  { %v477_v53 = vpop.permute.xlu0 %476 }
 0x42f   :  { %v479_v54 = vmul.f32 %v2737_v52, %v477_v53 }
 0x431   :  { %481 = vrot.lane.b32.xlu1 %v479_v54, %s2962_s22 }
 0x4a3   :  { %v482_v55 = vpop.permute.xlu1 %481 }
 0x4a4   :  { %v484_v56 = vadd.f32 %v482_v55, %v245_v47 }
 0x4a6   :  { %2738 = vtanh.f32 %v484_v56 }
 0x4b3   :  { %v2739_v59 = vpop.eup %2738 }
 0x4b4   :  { %488 = vrot.lane.b32.xlu0 %v2739_v59, %s2964_s29  ;;  %v260_v59 = vadd.f32 %v3130_v25, %v3116_v16 }
 0x526   :  { %v489_v61 = vpop.permute.xlu0 %488 }
 0x527   :  { %v491_v63 = vmul.f32 %v489_v61, %v486_v60 }
 0x529   :  { %v493_v1 = vadd.f32 %v492_v62, %v491_v63 }
 0x52b   :  { %495 = vrot.lane.b32.xlu1 %v493_v1, %s2964_s29 }
 0x59d   :  { %v3160_v2 = vpop.permute.xlu1 %495 }
 0x59e   :  { %2526 = vmatmul.mubr.msk.f32.vlgmr.msra.gmra.mxu0 %vm124_vm0, %v3160_v2 }
 0x59f   :  { %2540 = vmatpush3.msra.mxu0 %v3066_v5  ;;  %2547 = vmatprep.mubr.msk.f32.mxu0 %vm2961_vm2, %v2960_v0 }
 0x5a0   :  { %2541 = vmatprep.subr.mxu0 %v2960_v0 }
 0x5a1   :  { %2542 = vmatpush3.msra.mxu0 %v3070_v7 }
 0x5a2   :  { %2543 = vmatprep.subr.mxu0 %v2960_v0 }
 0x5a3   :  { %2544 = vmatpush3.msra.mxu0 %v3075_v11 }
 0x5a4   :  { %2545 = vmatprep.subr.mxu0 %v2960_v0 }
 0x5a5   :  { %2546 = vmatpush3.msra.mxu0 %v3081_v12 }
 0x5a6   :  { %2561 = vmatprep.subr.mxu0 %v2960_v0 }
 0x65e   :  { %v565_v6 = vpop.f32.mrf.mxu0 }
 0x65f   :  { %v576_v8 = vadd.f32 %v565_v6, %v3122_v19  ;;  %v569_v13 = vadd.f32 %v565_v6, %v250_v10 }
 0x660   :  { %v2527_v9 = vpop.f32.mrf.mxu0 }
 0x661   :  { %578 = vrot.lane.b32.xlu0 %v576_v8, %s2962_s22  ;;  %v2303_v14 = vmul.f32 -1.442695, %v569_v13 }
 0x663   :  { %2740 = vpow2.f32 %v2303_v14 }
 0x670   :  { %v2741_v20 = vpop.eup %2740 }
 0x671   :  { %v573_v21 = vadd.f32 1.0, %v2741_v20 }
 0x673   :  { %2742 = vrcp.f32 %v573_v21 }
 0x680   :  { %v2743_v22 = vpop.eup %2742 }
 0x681   :  { %v588_v29 = vsub.f32 1.0, %v2743_v22  ;;  %v594_v31 = vmul.f32 %v2743_v22, %v493_v1 }
 0x6d3   :  { %v579_v23 = vpop.permute.xlu0 %578 }
 0x6d4   :  { %v581_v24 = vmul.f32 %v2743_v22, %v579_v23 }
 0x6d6   :  { %583 = vrot.lane.b32.xlu1 %v581_v24, %s2962_s22  ;;  %v265_v24 = vadd.f32 %v3114_v15, %v3130_v25 }
 0x748   :  { %v584_v26 = vpop.permute.xlu1 %583 }
 0x749   :  { %v586_v27 = vadd.f32 %v584_v26, %v250_v10 }
 0x74b   :  { %2744 = vtanh.f32 %v586_v27 }
 0x758   :  { %v2745_v28 = vpop.eup %2744 }
 0x759   :  { %590 = vrot.lane.b32.xlu0 %v2745_v28, %s2964_s29 }
 0x7cb   :  { %v591_v30 = vpop.permute.xlu0 %590 }
 0x7cc   :  { %v593_v32 = vmul.f32 %v591_v30, %v588_v29 }
 0x7ce   :  { %v595_v33 = vadd.f32 %v594_v31, %v593_v32  ;;  %v1118_v32 = vld [vmem:[#allocation8 + $0x18] sm:$0xff] }
 0x7d0   :  { %597 = vrot.lane.b32.xlu1 %v595_v33, %s2964_s29 }
 0x842   :  { %v3180_v34 = vpop.permute.xlu1 %597 }
 0x843   :  { %2537 = vmatmul.mubr.msk.f32.vlgmr.msra.gmra.mxu1 %vm124_vm0, %v3180_v34 }
 0x844   :  { %2551 = vmatpush3.msra.mxu1 %v3066_v5  ;;  %2558 = vmatprep.mubr.msk.f32.mxu1 %vm2961_vm2, %v2960_v0 }
 0x845   :  { %2552 = vmatprep.subr.mxu1 %v2960_v0 }
 0x846   :  { %2553 = vmatpush3.msra.mxu1 %v3070_v7 }
 0x847   :  { %2554 = vmatprep.subr.mxu1 %v2960_v0 }
 0x848   :  { %2555 = vmatpush3.msra.mxu1 %v3075_v11 }
 0x849   :  { %2556 = vmatprep.subr.mxu1 %v2960_v0 }
 0x84a   :  { %2557 = vmatpush3.msra.mxu1 %v3081_v12 }
 0x84b   :  { %2572 = vmatprep.subr.mxu1 %v2960_v0 }
 0x903   :  { %v667_v35 = vpop.f32.mrf.mxu1 }
 0x904   :  { %v678_v36 = vadd.f32 %v667_v35, %v3122_v19  ;;  %v671_v39 = vadd.f32 %v667_v35, %v255_v38 }
 0x905   :  { %v2538_v37 = vpop.f32.mrf.mxu1 }
 0x906   :  { %680 = vrot.lane.b32.xlu0 %v678_v36, %s2962_s22  ;;  %v2305_v40 = vmul.f32 -1.442695, %v671_v39 }
 0x908   :  { %2746 = vpow2.f32 %v2305_v40  ;;  %v1117_v40 = vld [vmem:[#allocation8 + $0x10] sm:$0xff] }
 0x915   :  { %v2747_v41 = vpop.eup %2746 }
 0x916   :  { %v675_v42 = vadd.f32 1.0, %v2747_v41  ;;  %v1116_v41 = vld [vmem:[#allocation8 + $0x8] sm:$0xff] }
 0x918   :  { %2748 = vrcp.f32 %v675_v42  ;;  %v1115_v42 = vld [vmem:[#allocation8] sm:$0xff] }
 0x925   :  { %v2749_v44 = vpop.eup %2748 }
 0x926   :  { %v690_v50 = vsub.f32 1.0, %v2749_v44  ;;  %v696_v52 = vmul.f32 %v2749_v44, %v595_v33 }
 0x978   :  { %v681_v45 = vpop.permute.xlu0 %680 }
 0x979   :  { %v683_v46 = vmul.f32 %v2749_v44, %v681_v45 }
 0x97b   :  { %685 = vrot.lane.b32.xlu1 %v683_v46, %s2962_s22 }
 0x9ed   :  { %v686_v47 = vpop.permute.xlu1 %685 }
 0x9ee   :  { %v688_v48 = vadd.f32 %v686_v47, %v255_v38 }
 0x9f0   :  { %2750 = vtanh.f32 %v688_v48 }
 0x9fd   :  { %v2751_v49 = vpop.eup %2750 }
 0x9fe   :  { %692 = vrot.lane.b32.xlu0 %v2751_v49, %s2964_s29 }
 0xa70   :  { %v693_v51 = vpop.permute.xlu0 %692 }
 0xa71   :  { %v695_v53 = vmul.f32 %v693_v51, %v690_v50 }
 0xa73   :  { %v697_v54 = vadd.f32 %v696_v52, %v695_v53 }
 0xa75   :  { %699 = vrot.lane.b32.xlu1 %v697_v54, %s2964_s29 }
 0xae7   :  { %v3200_v55 = vpop.permute.xlu1 %699 }
 0xae8   :  { %2548 = vmatmul.mubr.msk.f32.vlgmr.msra.gmra.mxu0 %vm124_vm0, %v3200_v55 }
 0xae9   :  { %2562 = vmatpush3.msra.mxu0 %v3066_v5  ;;  %2569 = vmatprep.mubr.msk.f32.mxu0 %vm2961_vm2, %v2960_v0 }
 0xaea   :  { %2563 = vmatprep.subr.mxu0 %v2960_v0 }
 0xaeb   :  { %2564 = vmatpush3.msra.mxu0 %v3070_v7 }
 0xaec   :  { %2565 = vmatprep.subr.mxu0 %v2960_v0 }
 0xaed   :  { %2566 = vmatpush3.msra.mxu0 %v3075_v11 }
 0xaee   :  { %2567 = vmatprep.subr.mxu0 %v2960_v0 }
 0xaef   :  { %2568 = vmatpush3.msra.mxu0 %v3081_v12 }
 0xaf0   :  { %2583 = vmatprep.subr.mxu0 %v1118_v32 }
 0xba8   :  { %v769_v56 = vpop.f32.mrf.mxu0 }
 0xba9   :  { %v780_v57 = vadd.f32 %v769_v56, %v3122_v19  ;;  %v773_v60 = vadd.f32 %v769_v56, %v260_v59  ;;  %v3263_v56 = vld [vmem:[#allocation10 + $0x8] sm:$0xff] }
 0xbaa   :  { %v2549_v58 = vpop.f32.mrf.mxu0 }
 0xbab   :  { %782 = vrot.lane.b32.xlu0 %v780_v57, %s2962_s22  ;;  %v2307_v61 = vmul.f32 -1.442695, %v773_v60  ;;  %v3267_v57 = vld [vmem:[#allocation10] sm:$0xff] }
 0xbac   :  { %v2323_v60 = vld [vmem:[%s3535_s8] ss:$0 sm:$0xff] }
 0xbad   :  { %2752 = vpow2.f32 %v2307_v61 }
 0xbba   :  { %v2753_v62 = vpop.eup %2752 }
 0xbbb   :  { %v777_v63 = vadd.f32 1.0, %v2753_v62 }
 0xbbd   :  { %2754 = vrcp.f32 %v777_v63 }
 0xbca   :  { %v2755_v1 = vpop.eup %2754 }
 0xbcb   :  { %v792_v10 = vsub.f32 1.0, %v2755_v1  ;;  %v798_v16 = vmul.f32 %v2755_v1, %v697_v54 }
 0xc1d   :  { %v783_v3 = vpop.permute.xlu0 %782 }
 0xc1e   :  { %v785_v4 = vmul.f32 %v2755_v1, %v783_v3  ;;  %v1240_v3 = vld [vmem:[#allocation2 + $0x8] sm:$0xff] }
 0xc20   :  { %787 = vrot.lane.b32.xlu1 %v785_v4, %s2962_s22 }
 0xc92   :  { %v788_v6 = vpop.permute.xlu1 %787 }
 0xc93   :  { %v790_v8 = vadd.f32 %v788_v6, %v260_v59 }
 0xc95   :  { %2756 = vtanh.f32 %v790_v8 }
 0xca2   :  { %v2757_v9 = vpop.eup %2756 }
 0xca3   :  { %794 = vrot.lane.b32.xlu0 %v2757_v9, %s2964_s29 }
 0xd15   :  { %v795_v13 = vpop.permute.xlu0 %794 }
 0xd16   :  { %v797_v14 = vmul.f32 %v795_v13, %v792_v10 }
 0xd18   :  { %v799_v20 = vadd.f32 %v798_v16, %v797_v14 }
 0xd1a   :  { %801 = vrot.lane.b32.xlu1 %v799_v20, %s2964_s29 }
 0xd8c   :  { %v802_v21 = vpop.permute.xlu1 %801 }
 0xd8d   :  { %2559 = vmatmul.mubr.msk.f32.vlgmr.msra.gmra.mxu1 %vm124_vm0, %v802_v21 }
 0xd8e   :  { %2573 = vmatpush3.msra.mxu1 %v3066_v5  ;;  %2580 = vmatprep.mubr.msk.f32.mxu1 %vm2961_vm2, %v2960_v0 }
 0xd8f   :  { %2574 = vmatprep.subr.mxu1 %v2960_v0 }
 0xd90   :  { %2575 = vmatpush3.msra.mxu1 %v3070_v7 }
 0xd91   :  { %2576 = vmatprep.subr.mxu1 %v2960_v0 }
 0xd92   :  { %2577 = vmatpush3.msra.mxu1 %v3075_v11 }
 0xd93   :  { %2578 = vmatprep.subr.mxu1 %v2960_v0 }
 0xd94   :  { %2579 = vmatpush3.msra.mxu1 %v3081_v12 }
 0xd95   :  { %2603 = vmatprep.subr.mxu1 %v2960_v0 }
 0xe4d   :  { %v871_v22 = vpop.f32.mrf.mxu1 }
 0xe4e   :  { %v882_v5 = vadd.f32 %v871_v22, %v3122_v19  ;;  %v875_v7 = vadd.f32 %v871_v22, %v265_v24 }
 0xe4f   :  { %v2560_v23 = vpop.f32.mrf.mxu1 }
 0xe50   :  { %884 = vrot.lane.b32.xlu0 %v882_v5, %s2962_s22  ;;  %v2309_v26 = vmul.f32 -1.442695, %v875_v7 }
 0xe52   :  { %2758 = vpow2.f32 %v2309_v26 }
 0xe5f   :  { %v2759_v27 = vpop.eup %2758 }
 0xe60   :  { %v879_v11 = vadd.f32 1.0, %v2759_v27 }
 0xe62   :  { %2760 = vrcp.f32 %v879_v11 }
 0xe6f   :  { %v2761_v28 = vpop.eup %2760 }
 0xe70   :  { %v894_v15 = vsub.f32 1.0, %v2761_v28  ;;  %v900_v36 = vmul.f32 %v2761_v28, %v799_v20  ;;  %v3312_v20 = vld [vmem:[%s3534_s7] ss:$0 sm:$0xff] }
 0xec2   :  { %v885_v29 = vpop.permute.xlu0 %884 }
 0xec3   :  { %v887_v12 = vmul.f32 %v2761_v28, %v885_v29  ;;  %v275_v28 = vadd.f32 %v3118_v17, %v3130_v25 }
 0xec5   :  { %889 = vrot.lane.b32.xlu1 %v887_v12, %s2962_s22 }
 0xf37   :  { %v890_v30 = vpop.permute.xlu1 %889 }
 0xf38   :  { %v892_v31 = vadd.f32 %v890_v30, %v265_v24 }
 0xf3a   :  { %2762 = vtanh.f32 %v892_v31 }
 0xf47   :  { %v2763_v33 = vpop.eup %2762 }
 0xf48   :  { %896 = vrot.lane.b32.xlu0 %v2763_v33, %s2964_s29 }
 0xfba   :  { %v897_v35 = vpop.permute.xlu0 %896 }
 0xfbb   :  { %v899_v37 = vmul.f32 %v897_v35, %v894_v15 }
 0xfbd   :  { %v901_v38 = vadd.f32 %v900_v36, %v899_v37 }
 0xfbf   :  { %903 = vrot.lane.b32.xlu1 %v901_v38, %s2964_s29 }
0x1031   :  { %v904_v39 = vpop.permute.xlu1 %903 }
0x1032   :  { %2570 = vmatmul.mubr.msk.f32.vlgmr.msra.gmra.mxu0 %vm124_vm0, %v904_v39 }
0x1033   :  { %2584 = vmatpush3.msra.mxu0 %v1118_v32  ;;  %2591 = vmatprep.mubr.msk.f32.mxu0 %vm124_vm0, %v3136_v43 }
0x1034   :  { %2585 = vmatprep.subr.mxu0 %v1117_v40 }
0x1035   :  { %2586 = vmatpush3.msra.mxu0 %v1117_v40 }
0x1036   :  { %2587 = vmatprep.subr.mxu0 %v1116_v41 }
0x1037   :  { %2588 = vmatpush3.msra.mxu0 %v1116_v41 }
0x1038   :  { %2589 = vmatprep.subr.mxu0 %v1115_v42 }
0x1039   :  { %2590 = vmatpush3.msra.mxu0 %v1115_v42 }
0x103a   :  { %2592 = vmatmul.mubr.msk.f32.vlgmr.msra.gmra.mxu0 %vm124_vm0, %v3160_v2  ;;  %2625 = vmatprep.subr.mxu0 %v2960_v0  ;;  %v270_v2 = vadd.f32 %v3130_v25, %v3120_v18  ;;  %v3259_v18 = vld [vmem:[#allocation10 + $0x10] sm:$0xff] }
0x103b   :  { %2594 = vmatprep.mubr.msk.f32.mxu0 %vm124_vm0, %v3180_v34 }
0x103e   :  { %2595 = vmatmul.mubr.msk.f32.gmra.mxu0 %vm124_vm0, %v3200_v55  ;;  %v3256_v55 = vld [vmem:[#allocation10 + $0x18] sm:$0xff] }
0x103f   :  { %2597 = vmatprep.mubr.msk.f32.mxu0 %vm124_vm0, %v802_v21  ;;  %2626 = vmatpush3.msra.mxu0 %v3256_v55 }
0x1040   :  { %2627 = vmatprep.subr.mxu0 %v2960_v0 }
0x1041   :  { %2628 = vmatpush3.msra.mxu0 %v3259_v18 }
0x1042   :  { %2598 = vmatmul.mubr.msk.f32.gmra.mxu0 %vm124_vm0, %v904_v39  ;;  %2629 = vmatprep.subr.mxu0 %v2960_v0 }
0x1043   :  { %2630 = vmatpush3.msra.mxu0 %v3263_v56 }
0x1044   :  { %2631 = vmatprep.subr.mxu0 %v2960_v0 }
0x1045   :  { %2632 = vmatpush3.msra.mxu0 %v3267_v57 }
0x1046   :  { %2647 = vmatprep.subr.mxu0 %v2960_v0 }
0x10f2   :  { %v973_v43 = vpop.f32.mrf.mxu0 }
0x10f3   :  { %v984_v44 = vadd.f32 %v973_v43, %v3122_v19  ;;  %v977_v46 = vadd.f32 %v973_v43, %v270_v2 }
0x10f4   :  { %v2571_v45 = vpop.f32.mrf.mxu0 }
0x10f5   :  { %986 = vrot.lane.b32.xlu0 %v984_v44, %s2962_s22  ;;  %v2311_v47 = vmul.f32 -1.442695, %v977_v46 }
0x10f7   :  { %2764 = vpow2.f32 %v2311_v47 }
0x10fa   :  { %v3307_v16 = vpop.f32.mrf.mxu0 }
0x10fc   :  { %v1194_v14 = vpop.f32.mrf.mxu0 }
0x10fd   :  { %v1195_v21 = vadd.f32 %v3312_v20, %v1194_v14 }
0x10fe   :  { %v2596_v14 = vpop.f32.mrf.mxu0 }
0x1104   :  { %v2765_v34 = vpop.eup %2764 }
0x1105   :  { %v981_v48 = vadd.f32 1.0, %v2765_v34 }
0x1107   :  { %2766 = vrcp.f32 %v981_v48 }
0x1114   :  { %v2767_v49 = vpop.eup %2766 }
0x1115   :  { %v996_v58 = vsub.f32 1.0, %v2767_v49  ;;  %v1002_v61 = vmul.f32 %v2767_v49, %v901_v38 }
0x1167   :  { %v987_v50 = vpop.permute.xlu0 %986 }
0x1168   :  { %v989_v51 = vmul.f32 %v2767_v49, %v987_v50 }
0x116a   :  { %991 = vrot.lane.b32.xlu1 %v989_v51, %s2962_s22 }
0x11dc   :  { %v992_v52 = vpop.permute.xlu1 %991 }
0x11dd   :  { %v994_v53 = vadd.f32 %v992_v52, %v270_v2  ;;  %v1200_v52 = vadd.f32 %v3307_v16, %v3312_v20 }
0x11df   :  { %2768 = vtanh.f32 %v994_v53 }
0x11ec   :  { %v2769_v54 = vpop.eup %2768 }
0x11ed   :  { %998 = vrot.lane.b32.xlu0 %v2769_v54, %s2964_s29 }
0x11f1   :  { %1321 = vrot.lane.b32.xlu0 %v2323_v60, %s2962_s22 }
0x125f   :  { %v999_v59 = vpop.permute.xlu0 %998 }
0x1260   :  { %v1001_v62 = vmul.f32 %v999_v59, %v996_v58 }
0x1262   :  { %v3276_v63 = vadd.f32 %v1002_v61, %v1001_v62 }
0x1263   :  { %v3303_v8 = vpop.permute.xlu0 %1321 }
0x1264   :  { %1005 = vrot.lane.b32.xlu1 %v3276_v63, %s2964_s29 }
0x12d6   :  { %v1006_v1 = vpop.permute.xlu1 %1005 }
0x12d7   :  { %2581 = vmatmul.mubr.msk.f32.vlgmr.msra.gmra.mxu1 %vm124_vm0, %v1006_v1  ;;  %2600 = vmatprep.mubr.msk.f32.mxu0 %vm124_vm0, %v1006_v1 }
0x12d8   :  { %2604 = vmatpush3.msra.mxu1 %v3256_v55  ;;  %2611 = vmatprep.mubr.msk.f32.mxu1 %vm2961_vm2, %v2960_v0 }
0x12d9   :  { %2605 = vmatprep.subr.mxu1 %v2960_v0 }
0x12da   :  { %2606 = vmatpush3.msra.mxu1 %v3259_v18 }
0x12db   :  { %2607 = vmatprep.subr.mxu1 %v2960_v0 }
0x12dc   :  { %2608 = vmatpush3.msra.mxu1 %v3263_v56 }
0x12dd   :  { %2609 = vmatprep.subr.mxu1 %v2960_v0 }
0x12de   :  { %2610 = vmatpush3.msra.mxu1 %v3267_v57 }
0x12df   :  { %2612 = vmatmul.mubr.msk.f32.vlgmr.msra.gmra.mxu1 %vm124_vm0, %v1240_v3  ;;  %2614 = vmatprep.subr.mxu1 %v2960_v0 }
0x12e0   :  { %2615 = vmatpush3.msra.mxu1 %v3256_v55  ;;  %2622 = vmatprep.mubr.msk.f32.mxu1 %vm2961_vm2, %v2960_v0 }
0x12e1   :  { %2616 = vmatprep.subr.mxu1 %v2960_v0 }
0x12e2   :  { %2617 = vmatpush3.msra.mxu1 %v3259_v18 }
0x12e3   :  { %2618 = vmatprep.subr.mxu1 %v2960_v0 }
0x12e4   :  { %2619 = vmatpush3.msra.mxu1 %v3263_v56 }
0x12e5   :  { %2620 = vmatprep.subr.mxu1 %v2960_v0 }
0x12e6   :  { %2621 = vmatpush3.msra.mxu1 %v3267_v57 }
0x12e7   :  { %2636 = vmatprep.subr.mxu1 %v2960_v0 }
0x1397   :  { %v1075_v4 = vpop.f32.mrf.mxu1 }
0x1398   :  { %v1086_v11 = vadd.f32 %v1075_v4, %v3122_v19  ;;  %v1079_v29 = vadd.f32 %v1075_v4, %v275_v28 }
0x1399   :  { %v2582_v6 = vpop.f32.mrf.mxu1 }
0x139a   :  { %v2313_v12 = vmul.f32 -1.442695, %v1079_v29 }
0x139f   :  { %v1310_v9 = vpop.f32.mrf.mxu1 }
0x13a0   :  { %v1324_v10 = vadd.f32 %v3303_v8, %v1310_v9  ;;  %v1314_v22 = vadd.f32 %v1310_v9, %v1195_v21 }
0x13a1   :  { %v2613_v13 = vpop.f32.mrf.mxu1 }
0x13a2   :  { %1326 = vrot.lane.b32.xlu1 %v1324_v10, %s2962_s22  ;;  %v2325_v5 = vmul.f32 -1.442695, %v1314_v22 }
0x13a4   :  { %2770 = vpow2.f32 %v2325_v5 }
0x13b1   :  { %v2771_v23 = vpop.eup %2770 }
0x13b2   :  { %v1318_v24 = vadd.f32 1.0, %v2771_v23 }
0x13b4   :  { %2772 = vrcp.f32 %v1318_v24 }
0x13b5   :  { %2774 = vpow2.f32 %v2313_v12 }
0x13c1   :  { %v2773_v7 = vpop.eup %2772 }
0x13c2   :  { %v2775_v30 = vpop.eup %2774  ;;  %v1336_v25 = vsub.f32 1.0, %v2773_v7 }
0x13c3   :  { %v1083_v31 = vadd.f32 1.0, %v2775_v30 }
0x13c5   :  { %2776 = vrcp.f32 %v1083_v31 }
0x13d2   :  { %v2777_v35 = vpop.eup %2776 }
0x13d3   :  { %v1098_v45 = vsub.f32 1.0, %v2777_v35  ;;  %v1104_v46 = vmul.f32 %v2777_v35, %v3276_v63 }
0x1414   :  { %v1327_v26 = vpop.permute.xlu1 %1326 }
0x1415   :  { %v1329_v27 = vmul.f32 %v2773_v7, %v1327_v26 }
0x1417   :  { %1331 = vrot.lane.b32.xlu0 %v1329_v27, %s2962_s22 }
0x141b   :  { %1342 = vrot.lane.b32.xlu0 %v1240_v3, %s2963_s4 }
0x141f   :  { %1088 = vrot.lane.b32.xlu0 %v1086_v11, %s2962_s22 }
0x1489   :  { %v1332_v32 = vpop.permute.xlu0 %1331 }
0x148a   :  { %v1334_v33 = vadd.f32 %v1332_v32, %v1195_v21  ;;  %v1204_v21 = vpop.f32.mrf.mxu0 }
0x148b   :  { %v1205_v11 = vadd.f32 %v3312_v20, %v1204_v21 }
0x148c   :  { %2778 = vtanh.f32 %v1334_v33  ;;  %v3366_v22 = vpop.f32.mrf.mxu0 }
0x148d   :  { %v1343_v15 = vpop.permute.xlu0 %1342 }
0x148e   :  { %v1345_v40 = vmul.f32 %v2773_v7, %v1343_v15  ;;  %v3368_v5 = vpop.f32.mrf.mxu0 }
0x1491   :  { %v1089_v36 = vpop.permute.xlu0 %1088 }
0x1492   :  { %v1091_v37 = vmul.f32 %v2777_v35, %v1089_v36 }
0x1494   :  { %1093 = vrot.lane.b32.xlu0 %v1091_v37, %s2962_s22 }
0x1499   :  { %v2779_v19 = vpop.eup %2778 }
0x149a   :  { %1338 = vrot.lane.b32.xlu1 %v2779_v19, %s2964_s29 }
0x1506   :  { %v1094_v38 = vpop.permute.xlu0 %1093 }
0x1507   :  { %v1096_v17 = vadd.f32 %v1094_v38, %v275_v28 }
0x1509   :  { %2780 = vtanh.f32 %v1096_v17 }
0x150c   :  { %v1339_v39 = vpop.permute.xlu1 %1338 }
0x150d   :  { %v1341_v41 = vmul.f32 %v1339_v39, %v1336_v25 }
0x150f   :  { %v1346_v42 = vadd.f32 %v1345_v40, %v1341_v41 }
0x1511   :  { %1348 = vrot.lane.b32.xlu1 %v1346_v42, %s2964_s29 }
0x1516   :  { %v2781_v43 = vpop.eup %2780 }
0x1517   :  { %1100 = vrot.lane.b32.xlu0 %v2781_v43, %s2964_s29  ;;  %v1210_v43 = vadd.f32 %v2596_v14, %v3312_v20 }
0x1583   :  { %v3325_v44 = vpop.permute.xlu1 %1348 }
0x1584   :  { %2623 = vmatmul.mubr.msk.f32.vlgmr.msra.gmra.mxu1 %vm124_vm0, %v3325_v44 }
0x1585   :  { %2637 = vmatpush3.msra.mxu1 %v3256_v55  ;;  %2644 = vmatprep.mubr.msk.f32.mxu1 %vm2961_vm2, %v2960_v0 }
0x1586   :  { %2638 = vmatprep.subr.mxu1 %v2960_v0 }
0x1587   :  { %2639 = vmatpush3.msra.mxu1 %v3259_v18 }
0x1588   :  { %2640 = vmatprep.subr.mxu1 %v2960_v0 }
0x1589   :  { %v1101_v2 = vpop.permute.xlu0 %1100  ;;  %2641 = vmatpush3.msra.mxu1 %v3263_v56 }
0x158a   :  { %v1103_v47 = vmul.f32 %v1101_v2, %v1098_v45  ;;  %2642 = vmatprep.subr.mxu1 %v2960_v0 }
0x158b   :  { %2643 = vmatpush3.msra.mxu1 %v3267_v57 }
0x158c   :  { %v1105_v34 = vadd.f32 %v1104_v46, %v1103_v47  ;;  %2658 = vmatprep.subr.mxu1 %v2960_v0 }
0x158e   :  { %1107 = vrot.lane.b32.xlu0 %v1105_v34, %s2964_s29 }
0x1600   :  { %v1108_v48 = vpop.permute.xlu0 %1107 }
0x1601   :  { %1110 = vst.msk [vmem:[#allocation2] sm:$0xff] %vm124_vm0, %v1108_v48  ;;  %2601 = vmatmul.mubr.msk.f32.gmra.mxu0 %vm124_vm0, %v1108_v48 }
0x1602   :  { %2633 = vmatprep.mubr.msk.f32.mxu0 %vm2961_vm2, %v2960_v0 }
0x1644   :  { %v1418_v49 = vpop.f32.mrf.mxu1 }
0x1645   :  { %v1429_v50 = vadd.f32 %v1418_v49, %v3303_v8  ;;  %v1422_v53 = vadd.f32 %v1418_v49, %v1200_v52 }
0x1646   :  { %v2624_v51 = vpop.f32.mrf.mxu1 }
0x1647   :  { %1431 = vrot.lane.b32.xlu1 %v1429_v50, %s2962_s22  ;;  %v2327_v54 = vmul.f32 -1.442695, %v1422_v53 }
0x1649   :  { %2782 = vpow2.f32 %v2327_v54 }
0x1656   :  { %v2783_v58 = vpop.eup %2782 }
0x1657   :  { %v1426_v59 = vadd.f32 1.0, %v2783_v58 }
0x1659   :  { %2784 = vrcp.f32 %v1426_v59 }
0x1666   :  { %v2785_v60 = vpop.eup %2784 }
0x1667   :  { %v1441_v4 = vsub.f32 1.0, %v2785_v60  ;;  %v1447_v9 = vmul.f32 %v2785_v60, %v1346_v42 }
0x16b9   :  { %v1432_v61 = vpop.permute.xlu1 %1431 }
0x16ba   :  { %v1434_v62 = vmul.f32 %v2785_v60, %v1432_v61 }
0x16bc   :  { %1436 = vrot.lane.b32.xlu1 %v1434_v62, %s2962_s22 }
0x16c1   :  { %v3370_v23 = vpop.f32.mrf.mxu0 }
0x16c3   :  { %v3372_v24 = vpop.f32.mrf.mxu0 }
0x172e   :  { %v1437_v63 = vpop.permute.xlu1 %1436 }
0x172f   :  { %v1439_v1 = vadd.f32 %v1437_v63, %v1200_v52 }
0x1731   :  { %2786 = vtanh.f32 %v1439_v1 }
0x173e   :  { %v2787_v3 = vpop.eup %2786 }
0x173f   :  { %1443 = vrot.lane.b32.xlu1 %v2787_v3, %s2964_s29  ;;  %v1215_v3 = vadd.f32 %v3312_v20, %v3368_v5 }
0x17b1   :  { %v1444_v6 = vpop.permute.xlu1 %1443 }
0x17b2   :  { %v1446_v10 = vmul.f32 %v1444_v6, %v1441_v4 }
0x17b4   :  { %v1448_v13 = vadd.f32 %v1447_v9, %v1446_v10 }
0x17b6   :  { %1450 = vrot.lane.b32.xlu1 %v1448_v13, %s2964_s29 }
0x1828   :  { %v3352_v16 = vpop.permute.xlu1 %1450 }
0x1829   :  { %2634 = vmatmul.mubr.msk.f32.vlgmr.msra.gmra.mxu0 %vm124_vm0, %v3352_v16 }
0x182a   :  { %2648 = vmatpush3.msra.mxu0 %v3256_v55  ;;  %2655 = vmatprep.mubr.msk.f32.mxu0 %vm2961_vm2, %v2960_v0 }
0x182b   :  { %2649 = vmatprep.subr.mxu0 %v2960_v0 }
0x182c   :  { %2650 = vmatpush3.msra.mxu0 %v3259_v18 }
0x182d   :  { %2651 = vmatprep.subr.mxu0 %v2960_v0 }
0x182e   :  { %2652 = vmatpush3.msra.mxu0 %v3263_v56 }
0x182f   :  { %2653 = vmatprep.subr.mxu0 %v2960_v0 }
0x1830   :  { %2654 = vmatpush3.msra.mxu0 %v3267_v57 }
0x1831   :  { %2669 = vmatprep.subr.mxu0 %v2960_v0 }
0x18e9   :  { %v1520_v7 = vpop.f32.mrf.mxu0 }
0x18ea   :  { %v1531_v26 = vadd.f32 %v1520_v7, %v3303_v8  ;;  %v1524_v28 = vadd.f32 %v1520_v7, %v1205_v11 }
0x18eb   :  { %v2635_v27 = vpop.f32.mrf.mxu0 }
0x18ec   :  { %1533 = vrot.lane.b32.xlu0 %v1531_v26, %s2962_s22  ;;  %v2329_v29 = vmul.f32 -1.442695, %v1524_v28 }
0x18ee   :  { %2788 = vpow2.f32 %v2329_v29 }
0x18fb   :  { %v2789_v12 = vpop.eup %2788 }
0x18fc   :  { %v1528_v30 = vadd.f32 1.0, %v2789_v12 }
0x18fe   :  { %2790 = vrcp.f32 %v1528_v30 }
0x190b   :  { %v2791_v31 = vpop.eup %2790 }
0x190c   :  { %v1543_v37 = vsub.f32 1.0, %v2791_v31  ;;  %v1549_v38 = vmul.f32 %v2791_v31, %v1448_v13 }
0x195e   :  { %v1534_v32 = vpop.permute.xlu0 %1533 }
0x195f   :  { %v1536_v33 = vmul.f32 %v2791_v31, %v1534_v32 }
0x1961   :  { %1538 = vrot.lane.b32.xlu1 %v1536_v33, %s2962_s22 }
0x19d3   :  { %v1539_v15 = vpop.permute.xlu1 %1538 }
0x19d4   :  { %v1541_v35 = vadd.f32 %v1539_v15, %v1205_v11 }
0x19d6   :  { %2792 = vtanh.f32 %v1541_v35 }
0x19e3   :  { %v2793_v36 = vpop.eup %2792 }
0x19e4   :  { %1545 = vrot.lane.b32.xlu0 %v2793_v36, %s2964_s29 }
0x1a56   :  { %v1546_v19 = vpop.permute.xlu0 %1545 }
0x1a57   :  { %v1548_v17 = vmul.f32 %v1546_v19, %v1543_v37 }
0x1a59   :  { %v1550_v25 = vadd.f32 %v1549_v38, %v1548_v17  ;;  %v2069_v17 = vld [vmem:[#allocation11 + $0x18] sm:$0xff] }
0x1a5b   :  { %1552 = vrot.lane.b32.xlu1 %v1550_v25, %s2964_s29 }
0x1acd   :  { %v3380_v39 = vpop.permute.xlu1 %1552 }
0x1ace   :  { %2645 = vmatmul.mubr.msk.f32.vlgmr.msra.gmra.mxu1 %vm124_vm0, %v3380_v39 }
0x1acf   :  { %2659 = vmatpush3.msra.mxu1 %v3256_v55  ;;  %2666 = vmatprep.mubr.msk.f32.mxu1 %vm2961_vm2, %v2960_v0 }
0x1ad0   :  { %2660 = vmatprep.subr.mxu1 %v2960_v0 }
0x1ad1   :  { %2661 = vmatpush3.msra.mxu1 %v3259_v18 }
0x1ad2   :  { %2662 = vmatprep.subr.mxu1 %v2960_v0 }
0x1ad3   :  { %2663 = vmatpush3.msra.mxu1 %v3263_v56 }
0x1ad4   :  { %2664 = vmatprep.subr.mxu1 %v2960_v0 }
0x1ad5   :  { %2665 = vmatpush3.msra.mxu1 %v3267_v57 }
0x1ad6   :  { %2680 = vmatprep.subr.mxu1 %v2960_v0 }
0x1b8e   :  { %v1622_v40 = vpop.f32.mrf.mxu1 }
0x1b8f   :  { %v1633_v41 = vadd.f32 %v1622_v40, %v3303_v8  ;;  %v1626_v45 = vadd.f32 %v1622_v40, %v1210_v43 }
0x1b90   :  { %v2646_v42 = vpop.f32.mrf.mxu1 }
0x1b91   :  { %1635 = vrot.lane.b32.xlu0 %v1633_v41, %s2962_s22  ;;  %v2331_v2 = vmul.f32 -1.442695, %v1626_v45 }
0x1b93   :  { %2794 = vpow2.f32 %v2331_v2  ;;  %v2068_v2 = vld [vmem:[#allocation11 + $0x10] sm:$0xff] }
0x1ba0   :  { %v2795_v46 = vpop.eup %2794 }
0x1ba1   :  { %v1630_v47 = vadd.f32 1.0, %v2795_v46  ;;  %v2067_v46 = vld [vmem:[#allocation11 + $0x8] sm:$0xff] }
0x1ba3   :  { %2796 = vrcp.f32 %v1630_v47  ;;  %v2066_v47 = vld [vmem:[#allocation11] sm:$0xff] }
0x1bb0   :  { %v2797_v34 = vpop.eup %2796 }
0x1bb1   :  { %v1645_v53 = vsub.f32 1.0, %v2797_v34  ;;  %v1651_v58 = vmul.f32 %v2797_v34, %v1550_v25 }
0x1c03   :  { %v1636_v48 = vpop.permute.xlu0 %1635 }
0x1c04   :  { %v1638_v49 = vmul.f32 %v2797_v34, %v1636_v48 }
0x1c06   :  { %1640 = vrot.lane.b32.xlu1 %v1638_v49, %s2962_s22 }
0x1c78   :  { %v1641_v50 = vpop.permute.xlu1 %1640 }
0x1c79   :  { %v1643_v51 = vadd.f32 %v1641_v50, %v1210_v43 }
0x1c7b   :  { %2798 = vtanh.f32 %v1643_v51 }
0x1c88   :  { %v2799_v52 = vpop.eup %2798 }
0x1c89   :  { %1647 = vrot.lane.b32.xlu0 %v2799_v52, %s2964_s29 }
0x1cfb   :  { %v1648_v54 = vpop.permute.xlu0 %1647 }
0x1cfc   :  { %v1650_v59 = vmul.f32 %v1648_v54, %v1645_v53 }
0x1cfe   :  { %v1652_v60 = vadd.f32 %v1651_v58, %v1650_v59 }
0x1d00   :  { %1654 = vrot.lane.b32.xlu1 %v1652_v60, %s2964_s29 }
0x1d72   :  { %v3400_v61 = vpop.permute.xlu1 %1654 }
0x1d73   :  { %2656 = vmatmul.mubr.msk.f32.vlgmr.msra.gmra.mxu0 %vm124_vm0, %v3400_v61 }
0x1d74   :  { %2670 = vmatpush3.msra.mxu0 %v3256_v55  ;;  %2677 = vmatprep.mubr.msk.f32.mxu0 %vm2961_vm2, %v2960_v0 }
0x1d75   :  { %2671 = vmatprep.subr.mxu0 %v2960_v0 }
0x1d76   :  { %2672 = vmatpush3.msra.mxu0 %v3259_v18 }
0x1d77   :  { %2673 = vmatprep.subr.mxu0 %v2960_v0 }
0x1d78   :  { %2674 = vmatpush3.msra.mxu0 %v3263_v56 }
0x1d79   :  { %2675 = vmatprep.subr.mxu0 %v2960_v0 }
0x1d7a   :  { %2676 = vmatpush3.msra.mxu0 %v3267_v57 }
0x1d7b   :  { %2691 = vmatprep.subr.mxu0 %v2069_v17 }
0x1e33   :  { %v1724_v62 = vpop.f32.mrf.mxu0 }
0x1e34   :  { %v1735_v63 = vadd.f32 %v1724_v62, %v3303_v8  ;;  %v1728_v4 = vadd.f32 %v1724_v62, %v1215_v3 }
0x1e35   :  { %v2657_v1 = vpop.f32.mrf.mxu0 }
0x1e36   :  { %1737 = vrot.lane.b32.xlu0 %v1735_v63, %s2962_s22  ;;  %v2333_v6 = vmul.f32 -1.442695, %v1728_v4 }
0x1e38   :  { %2800 = vpow2.f32 %v2333_v6 }
0x1e45   :  { %v2801_v9 = vpop.eup %2800 }
0x1e46   :  { %v1732_v10 = vadd.f32 1.0, %v2801_v9 }
0x1e48   :  { %2802 = vrcp.f32 %v1732_v10 }
0x1e55   :  { %v2803_v13 = vpop.eup %2802 }
0x1e56   :  { %v1747_v11 = vsub.f32 1.0, %v2803_v13  ;;  %v1753_v5 = vmul.f32 %v2803_v13, %v1652_v60 }
0x1ea8   :  { %v1738_v14 = vpop.permute.xlu0 %1737 }
0x1ea9   :  { %v1740_v21 = vmul.f32 %v2803_v13, %v1738_v14 }
0x1eab   :  { %1742 = vrot.lane.b32.xlu1 %v1740_v21, %s2962_s22 }
0x1f1d   :  { %v1743_v7 = vpop.permute.xlu1 %1742 }
0x1f1e   :  { %v1745_v26 = vadd.f32 %v1743_v7, %v1215_v3 }
0x1f20   :  { %2804 = vtanh.f32 %v1745_v26 }
0x1f2d   :  { %v2805_v27 = vpop.eup %2804 }
0x1f2e   :  { %1749 = vrot.lane.b32.xlu0 %v2805_v27, %s2964_s29 }
0x1fa0   :  { %v1750_v28 = vpop.permute.xlu0 %1749 }
0x1fa1   :  { %v1752_v29 = vmul.f32 %v1750_v28, %v1747_v11 }
0x1fa3   :  { %v1754_v12 = vadd.f32 %v1753_v5, %v1752_v29 }
0x1fa5   :  { %1756 = vrot.lane.b32.xlu1 %v1754_v12, %s2964_s29 }
0x2017   :  { %v1757_v30 = vpop.permute.xlu1 %1756 }
0x2018   :  { %2667 = vmatmul.mubr.msk.f32.vlgmr.msra.gmra.mxu1 %vm124_vm0, %v1757_v30 }
0x2019   :  { %2681 = vmatpush3.msra.mxu1 %v3256_v55  ;;  %2688 = vmatprep.mubr.msk.f32.mxu1 %vm2961_vm2, %v2960_v0  ;;  %v1220_v55 = vadd.f32 %v3366_v22, %v3312_v20 }
0x201a   :  { %2682 = vmatprep.subr.mxu1 %v2960_v0 }
0x201b   :  { %2683 = vmatpush3.msra.mxu1 %v3259_v18 }
0x201c   :  { %2684 = vmatprep.subr.mxu1 %v2960_v0 }
0x201d   :  { %2685 = vmatpush3.msra.mxu1 %v3263_v56 }
0x201e   :  { %2686 = vmatprep.subr.mxu1 %v2960_v0 }
0x201f   :  { %2687 = vmatpush3.msra.mxu1 %v3267_v57 }
0x20d8   :  { %v1826_v31 = vpop.f32.mrf.mxu1 }
0x20d9   :  { %v1837_v32 = vadd.f32 %v1826_v31, %v3303_v8  ;;  %v1830_v15 = vadd.f32 %v1826_v31, %v1220_v55 }
0x20da   :  { %v2668_v33 = vpop.f32.mrf.mxu1 }
0x20db   :  { %1839 = vrot.lane.b32.xlu0 %v1837_v32, %s2962_s22  ;;  %v2335_v35 = vmul.f32 -1.442695, %v1830_v15 }
0x20dd   :  { %2806 = vpow2.f32 %v2335_v35 }
0x20ea   :  { %v2807_v18 = vpop.eup %2806 }
0x20eb   :  { %v1834_v36 = vadd.f32 1.0, %v2807_v18 }
0x20ed   :  { %2808 = vrcp.f32 %v1834_v36 }
0x20fa   :  { %v2809_v56 = vpop.eup %2808 }
0x20fb   :  { %v1849_v22 = vsub.f32 1.0, %v2809_v56  ;;  %v1855_v41 = vmul.f32 %v2809_v56, %v1754_v12 }
0x214d   :  { %v1840_v37 = vpop.permute.xlu0 %1839 }
0x214e   :  { %v1842_v19 = vmul.f32 %v2809_v56, %v1840_v37 }
0x2150   :  { %1844 = vrot.lane.b32.xlu1 %v1842_v19, %s2962_s22 }
0x21c2   :  { %v1845_v57 = vpop.permute.xlu1 %1844 }
0x21c3   :  { %v1847_v38 = vadd.f32 %v1845_v57, %v1220_v55 }
0x21c5   :  { %2810 = vtanh.f32 %v1847_v38 }
0x21d2   :  { %v2811_v25 = vpop.eup %2810 }
0x21d3   :  { %1851 = vrot.lane.b32.xlu0 %v2811_v25, %s2964_s29 }
0x2245   :  { %v1852_v40 = vpop.permute.xlu0 %1851 }
0x2246   :  { %v1854_v42 = vmul.f32 %v1852_v40, %v1849_v22 }
0x2248   :  { %v3436_v43 = vadd.f32 %v1855_v41, %v1854_v42 }
0x224a   :  { %1858 = vrot.lane.b32.xlu1 %v3436_v43, %s2964_s29 }
0x22bc   :  { %v1859_v45 = vpop.permute.xlu1 %1858 }
0x22bd   :  { %2678 = vmatmul.mubr.msk.f32.vlgmr.msra.gmra.mxu0 %vm124_vm0, %v1859_v45 }
0x22be   :  { %2692 = vmatpush3.msra.mxu0 %v2069_v17  ;;  %2699 = vmatprep.mubr.msk.f32.mxu0 %vm124_vm0, %v3325_v44 }
0x22bf   :  { %2693 = vmatprep.subr.mxu0 %v2068_v2 }
0x22c0   :  { %2694 = vmatpush3.msra.mxu0 %v2068_v2 }
0x22c1   :  { %2695 = vmatprep.subr.mxu0 %v2067_v46 }
0x22c2   :  { %2696 = vmatpush3.msra.mxu0 %v2067_v46 }
0x22c3   :  { %2697 = vmatprep.subr.mxu0 %v2066_v47 }
0x22c4   :  { %2698 = vmatpush3.msra.mxu0 %v2066_v47 }
0x22c5   :  { %2700 = vmatmul.mubr.msk.f32.vlgmr.msra.gmra.mxu0 %vm124_vm0, %v3352_v16  ;;  %v3459_v16 = vld [vmem:[%s3537_s10] ss:$0 sm:$0xff] }
0x22c6   :  { %2702 = vmatprep.mubr.msk.f32.mxu0 %vm124_vm0, %v3380_v39 }
0x22c9   :  { %2703 = vmatmul.mubr.msk.f32.gmra.mxu0 %vm124_vm0, %v3400_v61 }
0x22ca   :  { %2705 = vmatprep.mubr.msk.f32.mxu0 %vm124_vm0, %v1757_v30 }
0x22cd   :  { %2706 = vmatmul.mubr.msk.f32.gmra.mxu0 %vm124_vm0, %v1859_v45 }
0x237d   :  { %v3451_v44 = vpop.f32.mrf.mxu0 }
0x237e   :  { %v1939_v34 = vadd.f32 %v3451_v44, %v3303_v8 }
0x237f   :  { %v2679_v48 = vpop.f32.mrf.mxu0 }
0x2380   :  { %1941 = vrot.lane.b32.xlu0 %v1939_v34, %s2962_s22 }
0x2385   :  { %v2701_v39 = vpop.f32.mrf.mxu0 }
0x2386   :  { %v2151_v49 = vadd.f32 %v2701_v39, %v3459_v16 }
0x2387   :  { %v2145_v50 = vpop.f32.mrf.mxu0 }
0x2388   :  { %v2185_v51 = vand.u32 2147483647, %v2151_v49  ;;  %v2241_v52 = vmul.f32 %v2151_v49, %v2151_v49  ;;  %v2146_v53 = vadd.f32 %v3459_v16, %v2145_v50 }
0x2389   :  { %v2704_v54 = vpop.f32.mrf.mxu0 }
0x238a   :  { %vm2193_vm3 = vcmp.ge.f32.partialorder %v2185_v51, 0.1  ;;  %v2358_v58 = vadd.f32 -0.05, %v2185_v51  ;;  %v2184_v60 = vand.u32 2147483647, %v2146_v53  ;;  %v2240_v61 = vmul.f32 %v2146_v53, %v2146_v53 }
0x238b   :  { %v2350_v59 = vsel %vm2193_vm3, 1.0, %v2960_v0  ;;  %v2161_v62 = vadd.f32 %v2704_v54, %v3459_v16  ;;  %v2155_v63 = vpop.f32.mrf.mxu0  ;;  %v2249_v4 = vmul.f32 5.0, %v2241_v52 }
0x238c   :  { %v2225_v1 = vmul.f32 %v2358_v58, %v2350_v59  ;;  %v2233_v3 = vsub.f32 1.0, %v2350_v59  ;;  %v2156_v6 = vadd.f32 %v3459_v16, %v2155_v63  ;;  %vm2192_vm4 = vcmp.ge.f32.partialorder %v2184_v60, 0.1 }
0x238d   :  { %v2357_v9 = vadd.f32 -0.05, %v2184_v60  ;;  %v2187_v10 = vand.u32 2147483647, %v2161_v62  ;;  %v2243_v13 = vmul.f32 %v2161_v62, %v2161_v62  ;;  %v2707_v14 = vpop.f32.mrf.mxu0  ;;  %v2349_v7 = vsel %vm2192_vm4, 1.0, %v2960_v0 }
0x238e   :  { %v2257_v21 = vmul.f32 %v2249_v4, %v2233_v3  ;;  %v2186_v26 = vand.u32 2147483647, %v2156_v6  ;;  %v2242_v27 = vmul.f32 %v2156_v6, %v2156_v6  ;;  %v2232_v11 = vsub.f32 1.0, %v2349_v7 }
0x238f   :  { %v2248_v28 = vmul.f32 5.0, %v2240_v61  ;;  %vm2195_vm5 = vcmp.ge.f32.partialorder %v2187_v10, 0.1  ;;  %v2360_v5 = vadd.f32 -0.05, %v2187_v10  ;;  %v2224_v12 = vmul.f32 %v2357_v9, %v2349_v7  ;;  %v2165_v55 = vpop.f32.mrf.mxu0 }
0x2390   :  { %v2265_v29 = vadd.f32 %v2257_v21, %v2225_v1  ;;  %v2352_v30 = vsel %vm2195_vm5, 1.0, %v2960_v0  ;;  %v2251_v33 = vmul.f32 5.0, %v2243_v13  ;;  %vm2194_vm6 = vcmp.ge.f32.partialorder %v2186_v26, 0.1 }
0x2391   :  { %v2256_v31 = vmul.f32 %v2248_v28, %v2232_v11  ;;  %v2235_v32 = vsub.f32 1.0, %v2352_v30  ;;  %v2227_v15 = vmul.f32 %v2360_v5, %v2352_v30  ;;  %v2351_v35 = vsel %vm2194_vm6, 1.0, %v2960_v0 }
0x2392   :  { %2273 = vst.msk [vmem:[%s3538_s11 + $0x8] sm:$0xff] %vm124_vm0, %v2265_v29  ;;  %v2359_v18 = vadd.f32 -0.05, %v2186_v26  ;;  %v2250_v36 = vmul.f32 5.0, %v2242_v27  ;;  %v2234_v19 = vsub.f32 1.0, %v2351_v35  ;;  %v2171_v57 = vadd.f32 %v2707_v14, %v3459_v16 }
0x2393   :  { %v2264_v56 = vadd.f32 %v2256_v31, %v2224_v12  ;;  %v2259_v37 = vmul.f32 %v2251_v33, %v2235_v32  ;;  %v2166_v17 = vadd.f32 %v3459_v16, %v2165_v55  ;;  %v1225_v61 = vadd.f32 %v3312_v20, %v3372_v24 }
0x2394   :  { %v2226_v38 = vmul.f32 %v2359_v18, %v2351_v35  ;;  %v2258_v22 = vmul.f32 %v2250_v36, %v2234_v19  ;;  %v2189_v40 = vand.u32 2147483647, %v2171_v57  ;;  %v2245_v41 = vmul.f32 %v2171_v57, %v2171_v57 }
0x2395   :  { %2272 = vst.msk [vmem:[%s3538_s11] sm:$0xff] %vm124_vm0, %v2264_v56  ;;  %v2267_v25 = vadd.f32 %v2259_v37, %v2227_v15  ;;  %v2188_v42 = vand.u32 2147483647, %v2166_v17  ;;  %v2244_v45 = vmul.f32 %v2166_v17, %v2166_v17  ;;  %v1932_v62 = vadd.f32 %v3451_v44, %v1225_v61 }
0x2396   :  { %v2266_v2 = vadd.f32 %v2258_v22, %v2226_v38  ;;  %vm2197_vm7 = vcmp.ge.f32.partialorder %v2189_v40, 0.1  ;;  %v2362_v46 = vadd.f32 -0.05, %v2189_v40  ;;  %v2253_v39 = vmul.f32 5.0, %v2245_v41 }
0x2397   :  { %2275 = vst.msk [vmem:[%s3538_s11 + $0x18] sm:$0xff] %vm124_vm0, %v2267_v25  ;;  %v2354_v47 = vsel %vm2197_vm7, 1.0, %v2960_v0  ;;  %vm2196_vm8 = vcmp.ge.f32.partialorder %v2188_v42, 0.1  ;;  %v2361_v34 = vadd.f32 -0.05, %v2188_v42  ;;  %v1230_v29 = vadd.f32 %v3370_v23, %v3312_v20 }
0x2398   :  { %2274 = vst.msk [vmem:[%s3538_s11 + $0x10] sm:$0xff] %vm124_vm0, %v2266_v2  ;;  %v2237_v48 = vsub.f32 1.0, %v2354_v47  ;;  %v2353_v49 = vsel %vm2196_vm8, 1.0, %v2960_v0  ;;  %v2252_v51 = vmul.f32 5.0, %v2244_v45  ;;  %v2229_v52 = vmul.f32 %v2362_v46, %v2354_v47 }
0x2399   :  { %v2236_v50 = vsub.f32 1.0, %v2353_v49  ;;  %v2228_v54 = vmul.f32 %v2361_v34, %v2353_v49  ;;  %v2337_v63 = vmul.f32 -1.442695, %v1932_v62 }
0x239a   :  { %v2261_v53 = vmul.f32 %v2253_v39, %v2237_v48 }
0x239b   :  { %v2260_v58 = vmul.f32 %v2252_v51, %v2236_v50  ;;  %2812 = vpow2.f32 %v2337_v63 }
0x239c   :  { %v2269_v59 = vadd.f32 %v2261_v53, %v2229_v52 }
0x239d   :  { %v2268_v60 = vadd.f32 %v2260_v58, %v2228_v54 }
0x239e   :  { %2277 = vst.msk [vmem:[%s3538_s11 + $0x28] sm:$0xff] %vm124_vm0, %v2269_v59 }
0x239f   :  { %2276 = vst.msk [vmem:[%s3538_s11 + $0x20] sm:$0xff] %vm124_vm0, %v2268_v60 }
0x23a8   :  { %v2813_v1 = vpop.eup %2812 }
0x23a9   :  { %v1936_v3 = vadd.f32 1.0, %v2813_v1 }
0x23ab   :  { %2814 = vrcp.f32 %v1936_v3 }
0x23b8   :  { %v2815_v4 = vpop.eup %2814 }
0x23b9   :  { %v1951_v21 = vsub.f32 1.0, %v2815_v4  ;;  %v1957_v44 = vmul.f32 %v2815_v4, %v3436_v43 }
0x23f2   :  { %v1942_v6 = vpop.permute.xlu0 %1941 }
0x23f3   :  { %v1944_v9 = vmul.f32 %v2815_v4, %v1942_v6 }
0x23f5   :  { %1946 = vrot.lane.b32.xlu1 %v1944_v9, %s2962_s22 }
0x2467   :  { %v1947_v10 = vpop.permute.xlu1 %1946 }
0x2468   :  { %v1949_v13 = vadd.f32 %v1947_v10, %v1225_v61 }
0x246a   :  { %2816 = vtanh.f32 %v1949_v13 }
0x2477   :  { %v2817_v14 = vpop.eup %2816 }
0x2478   :  { %1953 = vrot.lane.b32.xlu0 %v2817_v14, %s2964_s29 }
0x24ea   :  { %v1954_v24 = vpop.permute.xlu0 %1953 }
0x24eb   :  { %v1956_v7 = vmul.f32 %v1954_v24, %v1951_v21 }
0x24ed   :  { %v1958_v26 = vadd.f32 %v1957_v44, %v1956_v7 }
0x24ef   :  { %1960 = vrot.lane.b32.xlu1 %v1958_v26, %s2964_s29 }
0x2561   :  { %v1961_v27 = vpop.permute.xlu1 %1960 }
0x2562   :  { %2689 = vmatmul.mubr.msk.f32.vlgmr.msra.gmra.mxu1 %vm124_vm0, %v1961_v27  ;;  %2708 = vmatprep.mubr.msk.f32.mxu0 %vm124_vm0, %v1961_v27 }
0x2622   :  { %v2030_v11 = vpop.f32.mrf.mxu1 }
0x2623   :  { %v2041_v28 = vadd.f32 %v2030_v11, %v3303_v8  ;;  %v2034_v12 = vadd.f32 %v2030_v11, %v1230_v29 }
0x2624   :  { %v2690_v5 = vpop.f32.mrf.mxu1 }
0x2625   :  { %2043 = vrot.lane.b32.xlu0 %v2041_v28, %s2962_s22  ;;  %v2339_v43 = vmul.f32 -1.442695, %v2034_v12 }
0x2627   :  { %2818 = vpow2.f32 %v2339_v43 }
0x2634   :  { %v2819_v30 = vpop.eup %2818 }
0x2635   :  { %v2038_v31 = vadd.f32 1.0, %v2819_v30 }
0x2637   :  { %2820 = vrcp.f32 %v2038_v31 }
0x2644   :  { %v2821_v32 = vpop.eup %2820 }
0x2645   :  { %v2053_v18 = vsub.f32 1.0, %v2821_v32  ;;  %v2059_v20 = vmul.f32 %v2821_v32, %v1958_v26 }
0x2697   :  { %v2044_v33 = vpop.permute.xlu0 %2043 }
0x2698   :  { %v2046_v55 = vmul.f32 %v2821_v32, %v2044_v33 }
0x269a   :  { %2048 = vrot.lane.b32.xlu1 %v2046_v55, %s2962_s22 }
0x270c   :  { %v2049_v15 = vpop.permute.xlu1 %2048 }
0x270d   :  { %v2051_v35 = vadd.f32 %v2049_v15, %v1230_v29 }
0x270f   :  { %2822 = vtanh.f32 %v2051_v35 }
0x271c   :  { %v2823_v8 = vpop.eup %2822 }
0x271d   :  { %2055 = vrot.lane.b32.xlu0 %v2823_v8, %s2964_s29 }
0x278f   :  { %v2056_v36 = vpop.permute.xlu0 %2055 }
0x2790   :  { %v2058_v23 = vmul.f32 %v2056_v36, %v2053_v18 }
0x2792   :  { %v2060_v56 = vadd.f32 %v2059_v20, %v2058_v23 }
0x2794   :  { %2062 = vrot.lane.b32.xlu1 %v2060_v56, %s2964_s29 }
0x2806   :  { %v2063_v37 = vpop.permute.xlu1 %2062 }
0x2807   :  { %2065 = vst.msk [vmem:[#allocation2 + $0x8] sm:$0xff] %vm124_vm0, %v2063_v37  ;;  %2709 = vmatmul.mubr.msk.f32.gmra.mxu0 %vm124_vm0, %v2063_v37 }
0x28c7   :  { %v2710_v19 = vpop.f32.mrf.mxu0 }
0x28c8   :  { %v2181_v57 = vadd.f32 %v2710_v19, %v3459_v16 }
0x28c9   :  { %v2175_v38 = vpop.f32.mrf.mxu0 }
0x28ca   :  { %v2191_v17 = vand.u32 2147483647, %v2181_v57  ;;  %v2247_v25 = vmul.f32 %v2181_v57, %v2181_v57  ;;  %v2176_v22 = vadd.f32 %v3459_v16, %v2175_v38 }
0x28cc   :  { %vm2199_vm9 = vcmp.ge.f32.partialorder %v2191_v17, 0.1  ;;  %v2364_v40 = vadd.f32 -0.05, %v2191_v17  ;;  %v2190_v42 = vand.u32 2147483647, %v2176_v22  ;;  %v2246_v45 = vmul.f32 %v2176_v22, %v2176_v22 }
0x28cd   :  { %v2356_v41 = vsel %vm2199_vm9, 1.0, %v2960_v0  ;;  %v2255_v46 = vmul.f32 5.0, %v2247_v25 }
0x28ce   :  { %v2239_v2 = vsub.f32 1.0, %v2356_v41  ;;  %vm2198_vm10 = vcmp.ge.f32.partialorder %v2190_v42, 0.1  ;;  %v2363_v47 = vadd.f32 -0.05, %v2190_v42  ;;  %v2231_v34 = vmul.f32 %v2364_v40, %v2356_v41 }
0x28cf   :  { %v2355_v39 = vsel %vm2198_vm10, 1.0, %v2960_v0  ;;  %v2254_v50 = vmul.f32 5.0, %v2246_v45 }
0x28d0   :  { %v2263_v48 = vmul.f32 %v2255_v46, %v2239_v2  ;;  %v2238_v49 = vsub.f32 1.0, %v2355_v39  ;;  %v2230_v52 = vmul.f32 %v2363_v47, %v2355_v39 }
0x28d2   :  { %v2271_v51 = vadd.f32 %v2263_v48, %v2231_v34  ;;  %v2262_v53 = vmul.f32 %v2254_v50, %v2238_v49 }
0x28d4   :  { %2279 = vst.msk [vmem:[%s3538_s11 + $0x38] sm:$0xff] %vm124_vm0, %v2271_v51  ;;  %v2270_v16 = vadd.f32 %v2262_v53, %v2230_v52 }
0x28d6   :  { %2278 = vst.msk [vmem:[%s3538_s11 + $0x30] sm:$0xff] %vm124_vm0, %v2270_v16 }
0x28d7   :  { %2284 = vsyncpa [#allocation4], 1 }
0x28d8   :  { %2285 = vsyncpa [#allocation6], 1 }
0x28d9   :  { %2286 = vsyncpa [#allocation9], 1 }
0x28da   :  { %2287 = vsyncpa [#allocation12], 1 }

</bundles_post_ra>
